<compile_context>
chip_gen: v6e
topology: v6e:2x2x1
jax: 0.10.0
libtpu: 0.0.40
codegen_flags: <defaults>
</compile_context>

<pallas_src>
import numpy as np
import jax
import jax.numpy as jnp
from jax.experimental import pallas as pl
from jax.experimental.pallas import tpu as pltpu

# ----------------------------- configuration ---------------------------------
DIM = 32                       # dim
NUM_HEADS = 4                  # num_heads
HEAD_DIM = DIM // NUM_HEADS
WINDOW_SIZE = (4, 4)           # window_size
N_WIN = WINDOW_SIZE[0] * WINDOW_SIZE[1]
SCALE = HEAD_DIM ** (-0.5)
MATMUL_DTYPE = jnp.bfloat16    # MXU operand dtype (f32 accumulation everywhere)


# ----------------------------- static tables (numpy) --------------------------
def relative_position_index(ws):
    coords_h = np.arange(ws[0])
    coords_w = np.arange(ws[1])
    coords = np.stack(np.meshgrid(coords_h, coords_w, indexing="ij"))     # (2,Wh,Ww)
    coords_flatten = coords.reshape(2, -1)
    rel = coords_flatten[:, :, None] - coords_flatten[:, None, :]         # (2,N,N)
    rel = rel.transpose(1, 2, 0).astype(np.int64)                         # (N,N,2)
    rel[:, :, 0] += ws[0] - 1
    rel[:, :, 1] += ws[1] - 1
    rel[:, :, 0] *= 2 * ws[1] - 1
    return rel.sum(-1)                                                    # (N,N)


def window_partition_np(x, ws):
    B, H, W, C = x.shape
    x = x.reshape(B, H // ws[0], ws[0], W // ws[1], ws[1], C)
    return x.transpose(0, 1, 3, 2, 4, 5).reshape(-1, ws[0], ws[1], C)


def compute_attn_mask(H, W, ws, ss):
    """Standard Swin shifted-window mask: (nW, N, N) with 0 / -100."""
    Hp = int(np.ceil(H / ws[0])) * ws[0]
    Wp = int(np.ceil(W / ws[1])) * ws[1]
    img_mask = np.zeros((1, Hp, Wp, 1), np.float32)
    h_slices = (slice(0, -ws[0]), slice(-ws[0], -ss[0]), slice(-ss[0], None))
    w_slices = (slice(0, -ws[1]), slice(-ws[1], -ss[1]), slice(-ss[1], None))
    cnt = 0
    for h in h_slices:
        for w in w_slices:
            img_mask[:, h, w, :] = cnt
            cnt += 1
    mw = window_partition_np(img_mask, ws).reshape(-1, ws[0] * ws[1])
    diff = mw[:, None, :] - mw[:, :, None]
    return np.where(diff != 0, -100.0, 0.0).astype(np.float32)            # (nW,N,N)


# ----------------------------- Pallas kernel ----------------------------------
def _window_attn_kernel(x_ref, wqkv_ref, bqkv_ref, wproj_ref, bproj_ref,
                        bias_ref, o_ref):
    """One grid step = one group of Wb windows.

    x_ref:     (Wb, N, C)       activations of the window group
    wqkv_ref:  (C, 3C)          fused qkv weight (x @ W convention)
    bqkv_ref:  (1, 3C)
    wproj_ref: (H, Hd, C)       projection weight, head split pre-folded
    bproj_ref: (1, C)
    bias_ref:  (H, kb, N, N)    rel-pos bias (+ shift mask); kb in {1, Wb}
    o_ref:     (Wb, N, C)
    """
    Wb, N, C = x_ref.shape
    H = bias_ref.shape[0]
    Hd = C // H

    x = x_ref[...].reshape(Wb * N, C)
    # fused qkv projection over the whole group: M = Wb*N
    qkv = jnp.dot(x.astype(MATMUL_DTYPE), wqkv_ref[...].astype(MATMUL_DTYPE),
                  preferred_element_type=jnp.float32) + bqkv_ref[...]     # (Wb*N, 3C)
    qkv = qkv.reshape(Wb, N, 3 * C)          # channel layout = (qkv_idx, head, hd)

    acc = jnp.zeros((Wb * N, C), jnp.float32)
    for h in range(H):                        # heads: contraction is per-head by construction
        q = qkv[:, :, h * Hd:(h + 1) * Hd] * SCALE                        # (Wb, N, Hd) f32
        k = qkv[:, :, C + h * Hd:C + (h + 1) * Hd]
        v = qkv[:, :, 2 * C + h * Hd:2 * C + (h + 1) * Hd]
        # window-batched q @ k^T -> (Wb, N, N), f32 accumulation
        s = jnp.einsum("wnd,wmd->wnm",
                       q.astype(MATMUL_DTYPE), k.astype(MATMUL_DTYPE),
                       preferred_element_type=jnp.float32)
        s = s + bias_ref[h]                                               # (kb,N,N) bcast
        s = s - jnp.max(s, axis=-1, keepdims=True)
        p = jnp.exp(s)
        p = p * pl.reciprocal(jnp.sum(p, axis=-1, keepdims=True), approx=True)
        # window-batched attn @ v -> (Wb, N, Hd)
        o_h = jnp.einsum("wnm,wmd->wnd",
                         p.astype(MATMUL_DTYPE), v.astype(MATMUL_DTYPE),
                         preferred_element_type=jnp.float32)
        # fold head->channel concat into the projection: y = sum_h o_h @ Wproj[h]
        acc = acc + jnp.dot(o_h.reshape(Wb * N, Hd).astype(MATMUL_DTYPE),
                            wproj_ref[h].astype(MATMUL_DTYPE),
                            preferred_element_type=jnp.float32)
    y = acc + bproj_ref[...]
    o_ref[...] = y.reshape(Wb, N, C).astype(o_ref.dtype)


def window_attention_pallas(x, wqkv, bqkv, wproj, bproj, rpb_table, rpi, mask=None):
    """Matches torch WindowAttention.forward (dropout prob = 0)."""
    B_, N, C = x.shape
    H = NUM_HEADS
    Hd = C // H

    # relative position bias gather (tiny, plain JAX glue) -> (H, N, N)
    rel_bias = rpb_table[jnp.asarray(rpi).reshape(-1)]
    rel_bias = rel_bias.reshape(N, N, H).transpose(2, 0, 1)

    if mask is not None:
        nW = int(mask.shape[0])
        assert B_ % nW == 0
        # pre-sum bias + shift mask once in JAX -> single (H, nW, N, N) stream
        bias = rel_bias[:, None, :, :] + jnp.asarray(mask)[None, :, :, :]
        win_block = nW                       # one grid step per image (all its windows)
    else:
        bias = rel_bias[:, None, :, :]       # (H, 1, N, N), no zero-mask add
        # fully collapsed grid, but keep 2 parallel steps when cheap (v7x: 2 TCs)
        win_block = B_ // 2 if (B_ % 2 == 0 and B_ >= 2) else B_
    kb = bias.shape[1]
    grid = (B_ // win_block,)

    return pl.pallas_call(
        _window_attn_kernel,
        out_shape=jax.ShapeDtypeStruct((B_, N, C), x.dtype),
        grid=grid,
        in_specs=[
            pl.BlockSpec((win_block, N, C), lambda g: (g, 0, 0)),      # x group
            pl.BlockSpec((C, 3 * C), lambda g: (0, 0)),                # qkv weight
            pl.BlockSpec((1, 3 * C), lambda g: (0, 0)),                # qkv bias
            pl.BlockSpec((H, Hd, C), lambda g: (0, 0, 0)),             # proj weight
            pl.BlockSpec((1, C), lambda g: (0, 0)),                    # proj bias
            pl.BlockSpec((H, kb, N, N), lambda g: (0, 0, 0, 0)),       # bias (+mask)
        ],
        out_specs=pl.BlockSpec((win_block, N, C), lambda g: (g, 0, 0)),
        compiler_params=pltpu.CompilerParams(dimension_semantics=("parallel",)),
    )(x, wqkv, bqkv.reshape(1, 3 * C), wproj.reshape(H, Hd, C),
      bproj.reshape(1, C), bias)


# ----------------------------- pure-JAX reference -----------------------------
def window_attention_ref(x, wqkv, bqkv, wproj, bproj, rpb_table, rpi, mask=None):
    B_, N, C = x.shape
    H = NUM_HEADS
    Hd = C // H
    qkv = x @ wqkv + bqkv                                                 # (B_, N, 3C)
    qkv = qkv.reshape(B_, N, 3, H, Hd).transpose(2, 0, 3, 1, 4)
    q, k, v = qkv[0] * SCALE, qkv[1], qkv[2]                              # (B_, H, N, Hd)
    attn = jnp.einsum("bhnd,bhmd->bhnm", q, k)
    rel_bias = rpb_table[jnp.asarray(rpi).reshape(-1)].reshape(N, N, H).transpose(2, 0, 1)
    attn = attn + rel_bias[None]
    if mask is not None:
        nW = mask.shape[0]
        attn = attn.reshape(B_ // nW, nW, H, N, N) + jnp.asarray(mask)[None, :, None]
        attn = attn.reshape(B_, H, N, N)
    attn = jax.nn.softmax(attn, axis=-1)
    out = jnp.einsum("bhnm,bhmd->bhnd", attn, v)
    out = out.transpose(0, 2, 1, 3).reshape(B_, N, C)
    return out @ wproj + bproj


# ----------------------------- main -------------------------------------------
if __name__ == "__main__":
    key = jax.random.PRNGKey(0)
    B, Himg, Wimg = 2, 8, 8
    nW = (Himg // WINDOW_SIZE[0]) * (Wimg // WINDOW_SIZE[1])              # 4 windows/img
    B_ = B * nW                                                           # 8
    N = N_WIN                                                             # 16
    C = DIM                                                               # 32

    ks = jax.random.split(key, 6)
    x = jax.random.normal(ks[0], (B_, N, C), jnp.float32)
    wqkv = 0.1 * jax.random.normal(ks[1], (C, 3 * C), jnp.float32)
    bqkv = 0.1 * jax.random.normal(ks[2], (3 * C,), jnp.float32)
    wproj = 0.1 * jax.random.normal(ks[3], (C, C), jnp.float32)
    bproj = 0.1 * jax.random.normal(ks[4], (C,), jnp.float32)
    table_len = (2 * WINDOW_SIZE[0] - 1) * (2 * WINDOW_SIZE[1] - 1)
    rpb_table = 0.02 * jax.random.normal(ks[5], (table_len, NUM_HEADS), jnp.float32)

    rpi = relative_position_index(WINDOW_SIZE)
    shift = (WINDOW_SIZE[0] // 2, WINDOW_SIZE[1] // 2)
    mask = compute_attn_mask(Himg, Wimg, WINDOW_SIZE, shift)              # (nW, N, N)

    # SW-MSA path (mask given) and W-MSA path (mask=None)
    out_shift = window_attention_pallas(x, wqkv, bqkv, wproj, bproj,
                                        rpb_table, rpi, mask=mask)
    out_plain = window_attention_pallas(x, wqkv, bqkv, wproj, bproj,
                                        rpb_table, rpi, mask=None)
    out_shift, out_plain = jax.block_until_ready((out_shift, out_plain))

    ref_shift = window_attention_ref(x, wqkv, bqkv, wproj, bproj, rpb_table, rpi, mask=mask)
    ref_plain = window_attention_ref(x, wqkv, bqkv, wproj, bproj, rpb_table, rpi, mask=None)

    assert out_shift.shape == (B_, N, C) and out_plain.shape == (B_, N, C)
    assert bool(jnp.all(jnp.isfinite(out_shift))) and bool(jnp.all(jnp.isfinite(out_plain)))
    # bf16 MXU operands + approx reciprocal -> loose-but-meaningful tolerance vs f32 ref
    assert float(jnp.max(jnp.abs(out_shift - ref_shift))) < 3e-2
    assert float(jnp.max(jnp.abs(out_plain - ref_plain))) < 3e-2

    print("KERNEL_OK")
</pallas_src>

<mosaic_0001>
module attributes {stable_mosaic.version = 11 : i64} {
  func.func @_window_attn_kernel(%arg0: i32, %arg1: memref<4x16x32xf32, #tpu.memory_space<vmem>>, %arg2: memref<32x96xf32, #tpu.memory_space<vmem>>, %arg3: memref<1x96xf32, #tpu.memory_space<vmem>>, %arg4: memref<4x8x32xf32, #tpu.memory_space<vmem>>, %arg5: memref<1x32xf32, #tpu.memory_space<vmem>>, %arg6: memref<4x4x16x16xf32, #tpu.memory_space<vmem>>, %arg7: memref<4x16x32xf32, #tpu.memory_space<vmem>>) attributes {dimension_semantics = [#tpu.dimension_semantics<parallel>], iteration_bounds = array<i64: 2>, scalar_prefetch = 0 : i64, scratch_operands = 0 : i64, tpu.core_type = #tpu.core_type<tc>, window_params = [{transform_indices = @transform_0, window_bounds = array<i64: 4, 16, 32>}, {pipeline_mode = #tpu.pipeline_mode<synchronous>, transform_indices = @transform_1, window_bounds = array<i64: 32, 96>}, {pipeline_mode = #tpu.pipeline_mode<synchronous>, transform_indices = @transform_2, window_bounds = array<i64: 1, 96>}, {pipeline_mode = #tpu.pipeline_mode<synchronous>, transform_indices = @transform_3, window_bounds = array<i64: 4, 8, 32>}, {pipeline_mode = #tpu.pipeline_mode<synchronous>, transform_indices = @transform_4, window_bounds = array<i64: 1, 32>}, {pipeline_mode = #tpu.pipeline_mode<synchronous>, transform_indices = @transform_5, window_bounds = array<i64: 4, 4, 16, 16>}, {transform_indices = @transform_6, window_bounds = array<i64: 4, 16, 32>}]} {
    %c0 = arith.constant 0 : index
    %c0_0 = arith.constant 0 : index
    %c0_1 = arith.constant 0 : index
    %0 = vector.load %arg1[%c0, %c0_0, %c0_1] : memref<4x16x32xf32, #tpu.memory_space<vmem>>, vector<4x16x32xf32>
    %1 = vector.shape_cast %0 : vector<4x16x32xf32> to vector<64x32xf32>
    %2 = arith.truncf %1 : vector<64x32xf32> to vector<64x32xbf16>
    %c0_2 = arith.constant 0 : index
    %c0_3 = arith.constant 0 : index
    %3 = vector.load %arg2[%c0_2, %c0_3] : memref<32x96xf32, #tpu.memory_space<vmem>>, vector<32x96xf32>
    %4 = arith.truncf %3 : vector<32x96xf32> to vector<32x96xbf16>
    %cst = arith.constant dense<0.000000e+00> : vector<64x96xf32>
    %5 = tpu.matmul %2, %4, %cst {dimension_numbers = #tpu.dot_dimension_numbers<[1], [0], [0], [1], [0, 0, 1, 1], [], []>} : vector<64x32xbf16>, vector<32x96xbf16>, vector<64x96xf32> -> vector<64x96xf32>
    %c0_4 = arith.constant 0 : index
    %c0_5 = arith.constant 0 : index
    %6 = vector.load %arg3[%c0_4, %c0_5] : memref<1x96xf32, #tpu.memory_space<vmem>>, vector<1x96xf32>
    %7 = vector.broadcast %6 : vector<1x96xf32> to vector<64x96xf32>
    %8 = arith.addf %5, %7 : vector<64x96xf32>
    %9 = vector.shape_cast %8 : vector<64x96xf32> to vector<4x16x96xf32>
    %cst_6 = arith.constant 0.000000e+00 : f32
    %10 = vector.broadcast %cst_6 : f32 to vector<64x32xf32>
    %11 = vector.extract_strided_slice %9 {offsets = [0, 0, 0], sizes = [4, 16, 8], strides = [1, 1, 1]} : vector<4x16x96xf32> to vector<4x16x8xf32>
    %cst_7 = arith.constant 0.353553385 : f32
    %12 = vector.broadcast %cst_7 : f32 to vector<4x16x8xf32>
    %13 = arith.mulf %11, %12 : vector<4x16x8xf32>
    %14 = vector.extract_strided_slice %9 {offsets = [0, 0, 32], sizes = [4, 16, 8], strides = [1, 1, 1]} : vector<4x16x96xf32> to vector<4x16x8xf32>
    %15 = vector.extract_strided_slice %9 {offsets = [0, 0, 64], sizes = [4, 16, 8], strides = [1, 1, 1]} : vector<4x16x96xf32> to vector<4x16x8xf32>
    %16 = arith.truncf %13 : vector<4x16x8xf32> to vector<4x16x8xbf16>
    %17 = arith.truncf %14 : vector<4x16x8xf32> to vector<4x16x8xbf16>
    "tpu.trace_start"() <{level = 10 : i32, message = "wnd,wmd->wnm"}> : () -> ()
    %cst_8 = arith.constant dense<0.000000e+00> : vector<4x16x16xf32>
    %18 = tpu.matmul %16, %17, %cst_8 {dimension_numbers = #tpu.dot_dimension_numbers<[2], [2], [1], [1], [0, 0, 0, 1, 1, 1], [0], [0]>} : vector<4x16x8xbf16>, vector<4x16x8xbf16>, vector<4x16x16xf32> -> vector<4x16x16xf32>
    "tpu.trace_stop"() : () -> ()
    %c0_9 = arith.constant 0 : index
    %c0_10 = arith.constant 0 : index
    %c0_11 = arith.constant 0 : index
    %c0_12 = arith.constant 0 : index
    %19 = vector.load %arg6[%c0_9, %c0_10, %c0_11, %c0_12] : memref<4x4x16x16xf32, #tpu.memory_space<vmem>>, vector<1x4x16x16xf32>
    %20 = vector.shape_cast %19 : vector<1x4x16x16xf32> to vector<4x16x16xf32>
    %21 = arith.addf %18, %20 : vector<4x16x16xf32>
    %cst_13 = arith.constant dense<0xFF800000> : vector<4x16xf32>
    %22 = vector.multi_reduction <maximumf>, %21, %cst_13 [2] : vector<4x16x16xf32> to vector<4x16xf32>
    %23 = vector.shape_cast %22 : vector<4x16xf32> to vector<4x16x1xf32>
    %24 = vector.broadcast %23 : vector<4x16x1xf32> to vector<4x16x16xf32>
    %25 = arith.subf %21, %24 : vector<4x16x16xf32>
    %26 = math.exp %25 : vector<4x16x16xf32>
    %cst_14 = arith.constant dense<0.000000e+00> : vector<4x16xf32>
    %27 = vector.multi_reduction <add>, %26, %cst_14 [2] : vector<4x16x16xf32> to vector<4x16xf32>
    %28 = vector.shape_cast %27 : vector<4x16xf32> to vector<4x16x1xf32>
    %29 = tpu.reciprocal %28 {approx = true} : vector<4x16x1xf32> -> vector<4x16x1xf32>
    %30 = vector.broadcast %29 : vector<4x16x1xf32> to vector<4x16x16xf32>
    %31 = arith.mulf %26, %30 : vector<4x16x16xf32>
    %32 = arith.truncf %31 : vector<4x16x16xf32> to vector<4x16x16xbf16>
    %33 = arith.truncf %15 : vector<4x16x8xf32> to vector<4x16x8xbf16>
    "tpu.trace_start"() <{level = 10 : i32, message = "wnm,wmd->wnd"}> : () -> ()
    %cst_15 = arith.constant dense<0.000000e+00> : vector<4x16x8xf32>
    %34 = tpu.matmul %32, %33, %cst_15 {dimension_numbers = #tpu.dot_dimension_numbers<[2], [1], [1], [2], [0, 0, 0, 1, 1, 2], [0], [0]>} : vector<4x16x16xbf16>, vector<4x16x8xbf16>, vector<4x16x8xf32> -> vector<4x16x8xf32>
    "tpu.trace_stop"() : () -> ()
    %35 = vector.shape_cast %34 : vector<4x16x8xf32> to vector<64x8xf32>
    %36 = arith.truncf %35 : vector<64x8xf32> to vector<64x8xbf16>
    %c0_16 = arith.constant 0 : index
    %c0_17 = arith.constant 0 : index
    %c0_18 = arith.constant 0 : index
    %37 = vector.load %arg4[%c0_16, %c0_17, %c0_18] : memref<4x8x32xf32, #tpu.memory_space<vmem>>, vector<1x8x32xf32>
    %38 = vector.shape_cast %37 : vector<1x8x32xf32> to vector<8x32xf32>
    %39 = arith.truncf %38 : vector<8x32xf32> to vector<8x32xbf16>
    %cst_19 = arith.constant dense<0.000000e+00> : vector<64x32xf32>
    %40 = tpu.matmul %36, %39, %cst_19 {dimension_numbers = #tpu.dot_dimension_numbers<[1], [0], [0], [1], [0, 0, 1, 1], [], []>} : vector<64x8xbf16>, vector<8x32xbf16>, vector<64x32xf32> -> vector<64x32xf32>
    %41 = arith.addf %10, %40 : vector<64x32xf32>
    %42 = vector.extract_strided_slice %9 {offsets = [0, 0, 8], sizes = [4, 16, 8], strides = [1, 1, 1]} : vector<4x16x96xf32> to vector<4x16x8xf32>
    %cst_20 = arith.constant 0.353553385 : f32
    %43 = vector.broadcast %cst_20 : f32 to vector<4x16x8xf32>
    %44 = arith.mulf %42, %43 : vector<4x16x8xf32>
    %45 = vector.extract_strided_slice %9 {offsets = [0, 0, 40], sizes = [4, 16, 8], strides = [1, 1, 1]} : vector<4x16x96xf32> to vector<4x16x8xf32>
    %46 = vector.extract_strided_slice %9 {offsets = [0, 0, 72], sizes = [4, 16, 8], strides = [1, 1, 1]} : vector<4x16x96xf32> to vector<4x16x8xf32>
    %47 = arith.truncf %44 : vector<4x16x8xf32> to vector<4x16x8xbf16>
    %48 = arith.truncf %45 : vector<4x16x8xf32> to vector<4x16x8xbf16>
    "tpu.trace_start"() <{level = 10 : i32, message = "wnd,wmd->wnm"}> : () -> ()
    %cst_21 = arith.constant dense<0.000000e+00> : vector<4x16x16xf32>
    %49 = tpu.matmul %47, %48, %cst_21 {dimension_numbers = #tpu.dot_dimension_numbers<[2], [2], [1], [1], [0, 0, 0, 1, 1, 1], [0], [0]>} : vector<4x16x8xbf16>, vector<4x16x8xbf16>, vector<4x16x16xf32> -> vector<4x16x16xf32>
    "tpu.trace_stop"() : () -> ()
    %c1 = arith.constant 1 : index
    %c0_22 = arith.constant 0 : index
    %c0_23 = arith.constant 0 : index
    %c0_24 = arith.constant 0 : index
    %50 = vector.load %arg6[%c1, %c0_22, %c0_23, %c0_24] : memref<4x4x16x16xf32, #tpu.memory_space<vmem>>, vector<1x4x16x16xf32>
    %51 = vector.shape_cast %50 : vector<1x4x16x16xf32> to vector<4x16x16xf32>
    %52 = arith.addf %49, %51 : vector<4x16x16xf32>
    %cst_25 = arith.constant dense<0xFF800000> : vector<4x16xf32>
    %53 = vector.multi_reduction <maximumf>, %52, %cst_25 [2] : vector<4x16x16xf32> to vector<4x16xf32>
    %54 = vector.shape_cast %53 : vector<4x16xf32> to vector<4x16x1xf32>
    %55 = vector.broadcast %54 : vector<4x16x1xf32> to vector<4x16x16xf32>
    %56 = arith.subf %52, %55 : vector<4x16x16xf32>
    %57 = math.exp %56 : vector<4x16x16xf32>
    %cst_26 = arith.constant dense<0.000000e+00> : vector<4x16xf32>
    %58 = vector.multi_reduction <add>, %57, %cst_26 [2] : vector<4x16x16xf32> to vector<4x16xf32>
    %59 = vector.shape_cast %58 : vector<4x16xf32> to vector<4x16x1xf32>
    %60 = tpu.reciprocal %59 {approx = true} : vector<4x16x1xf32> -> vector<4x16x1xf32>
    %61 = vector.broadcast %60 : vector<4x16x1xf32> to vector<4x16x16xf32>
    %62 = arith.mulf %57, %61 : vector<4x16x16xf32>
    %63 = arith.truncf %62 : vector<4x16x16xf32> to vector<4x16x16xbf16>
    %64 = arith.truncf %46 : vector<4x16x8xf32> to vector<4x16x8xbf16>
    "tpu.trace_start"() <{level = 10 : i32, message = "wnm,wmd->wnd"}> : () -> ()
    %cst_27 = arith.constant dense<0.000000e+00> : vector<4x16x8xf32>
    %65 = tpu.matmul %63, %64, %cst_27 {dimension_numbers = #tpu.dot_dimension_numbers<[2], [1], [1], [2], [0, 0, 0, 1, 1, 2], [0], [0]>} : vector<4x16x16xbf16>, vector<4x16x8xbf16>, vector<4x16x8xf32> -> vector<4x16x8xf32>
    "tpu.trace_stop"() : () -> ()
    %66 = vector.shape_cast %65 : vector<4x16x8xf32> to vector<64x8xf32>
    %67 = arith.truncf %66 : vector<64x8xf32> to vector<64x8xbf16>
    %c1_28 = arith.constant 1 : index
    %c0_29 = arith.constant 0 : index
    %c0_30 = arith.constant 0 : index
    %68 = vector.load %arg4[%c1_28, %c0_29, %c0_30] : memref<4x8x32xf32, #tpu.memory_space<vmem>>, vector<1x8x32xf32>
    %69 = vector.shape_cast %68 : vector<1x8x32xf32> to vector<8x32xf32>
    %70 = arith.truncf %69 : vector<8x32xf32> to vector<8x32xbf16>
    %cst_31 = arith.constant dense<0.000000e+00> : vector<64x32xf32>
    %71 = tpu.matmul %67, %70, %cst_31 {dimension_numbers = #tpu.dot_dimension_numbers<[1], [0], [0], [1], [0, 0, 1, 1], [], []>} : vector<64x8xbf16>, vector<8x32xbf16>, vector<64x32xf32> -> vector<64x32xf32>
    %72 = arith.addf %41, %71 : vector<64x32xf32>
    %73 = vector.extract_strided_slice %9 {offsets = [0, 0, 16], sizes = [4, 16, 8], strides = [1, 1, 1]} : vector<4x16x96xf32> to vector<4x16x8xf32>
    %cst_32 = arith.constant 0.353553385 : f32
    %74 = vector.broadcast %cst_32 : f32 to vector<4x16x8xf32>
    %75 = arith.mulf %73, %74 : vector<4x16x8xf32>
    %76 = vector.extract_strided_slice %9 {offsets = [0, 0, 48], sizes = [4, 16, 8], strides = [1, 1, 1]} : vector<4x16x96xf32> to vector<4x16x8xf32>
    %77 = vector.extract_strided_slice %9 {offsets = [0, 0, 80], sizes = [4, 16, 8], strides = [1, 1, 1]} : vector<4x16x96xf32> to vector<4x16x8xf32>
    %78 = arith.truncf %75 : vector<4x16x8xf32> to vector<4x16x8xbf16>
    %79 = arith.truncf %76 : vector<4x16x8xf32> to vector<4x16x8xbf16>
    "tpu.trace_start"() <{level = 10 : i32, message = "wnd,wmd->wnm"}> : () -> ()
    %cst_33 = arith.constant dense<0.000000e+00> : vector<4x16x16xf32>
    %80 = tpu.matmul %78, %79, %cst_33 {dimension_numbers = #tpu.dot_dimension_numbers<[2], [2], [1], [1], [0, 0, 0, 1, 1, 1], [0], [0]>} : vector<4x16x8xbf16>, vector<4x16x8xbf16>, vector<4x16x16xf32> -> vector<4x16x16xf32>
    "tpu.trace_stop"() : () -> ()
    %c2 = arith.constant 2 : index
    %c0_34 = arith.constant 0 : index
    %c0_35 = arith.constant 0 : index
    %c0_36 = arith.constant 0 : index
    %81 = vector.load %arg6[%c2, %c0_34, %c0_35, %c0_36] : memref<4x4x16x16xf32, #tpu.memory_space<vmem>>, vector<1x4x16x16xf32>
    %82 = vector.shape_cast %81 : vector<1x4x16x16xf32> to vector<4x16x16xf32>
    %83 = arith.addf %80, %82 : vector<4x16x16xf32>
    %cst_37 = arith.constant dense<0xFF800000> : vector<4x16xf32>
    %84 = vector.multi_reduction <maximumf>, %83, %cst_37 [2] : vector<4x16x16xf32> to vector<4x16xf32>
    %85 = vector.shape_cast %84 : vector<4x16xf32> to vector<4x16x1xf32>
    %86 = vector.broadcast %85 : vector<4x16x1xf32> to vector<4x16x16xf32>
    %87 = arith.subf %83, %86 : vector<4x16x16xf32>
    %88 = math.exp %87 : vector<4x16x16xf32>
    %cst_38 = arith.constant dense<0.000000e+00> : vector<4x16xf32>
    %89 = vector.multi_reduction <add>, %88, %cst_38 [2] : vector<4x16x16xf32> to vector<4x16xf32>
    %90 = vector.shape_cast %89 : vector<4x16xf32> to vector<4x16x1xf32>
    %91 = tpu.reciprocal %90 {approx = true} : vector<4x16x1xf32> -> vector<4x16x1xf32>
    %92 = vector.broadcast %91 : vector<4x16x1xf32> to vector<4x16x16xf32>
    %93 = arith.mulf %88, %92 : vector<4x16x16xf32>
    %94 = arith.truncf %93 : vector<4x16x16xf32> to vector<4x16x16xbf16>
    %95 = arith.truncf %77 : vector<4x16x8xf32> to vector<4x16x8xbf16>
    "tpu.trace_start"() <{level = 10 : i32, message = "wnm,wmd->wnd"}> : () -> ()
    %cst_39 = arith.constant dense<0.000000e+00> : vector<4x16x8xf32>
    %96 = tpu.matmul %94, %95, %cst_39 {dimension_numbers = #tpu.dot_dimension_numbers<[2], [1], [1], [2], [0, 0, 0, 1, 1, 2], [0], [0]>} : vector<4x16x16xbf16>, vector<4x16x8xbf16>, vector<4x16x8xf32> -> vector<4x16x8xf32>
    "tpu.trace_stop"() : () -> ()
    %97 = vector.shape_cast %96 : vector<4x16x8xf32> to vector<64x8xf32>
    %98 = arith.truncf %97 : vector<64x8xf32> to vector<64x8xbf16>
    %c2_40 = arith.constant 2 : index
    %c0_41 = arith.constant 0 : index
    %c0_42 = arith.constant 0 : index
    %99 = vector.load %arg4[%c2_40, %c0_41, %c0_42] : memref<4x8x32xf32, #tpu.memory_space<vmem>>, vector<1x8x32xf32>
    %100 = vector.shape_cast %99 : vector<1x8x32xf32> to vector<8x32xf32>
    %101 = arith.truncf %100 : vector<8x32xf32> to vector<8x32xbf16>
    %cst_43 = arith.constant dense<0.000000e+00> : vector<64x32xf32>
    %102 = tpu.matmul %98, %101, %cst_43 {dimension_numbers = #tpu.dot_dimension_numbers<[1], [0], [0], [1], [0, 0, 1, 1], [], []>} : vector<64x8xbf16>, vector<8x32xbf16>, vector<64x32xf32> -> vector<64x32xf32>
    %103 = arith.addf %72, %102 : vector<64x32xf32>
    %104 = vector.extract_strided_slice %9 {offsets = [0, 0, 24], sizes = [4, 16, 8], strides = [1, 1, 1]} : vector<4x16x96xf32> to vector<4x16x8xf32>
    %cst_44 = arith.constant 0.353553385 : f32
    %105 = vector.broadcast %cst_44 : f32 to vector<4x16x8xf32>
    %106 = arith.mulf %104, %105 : vector<4x16x8xf32>
    %107 = vector.extract_strided_slice %9 {offsets = [0, 0, 56], sizes = [4, 16, 8], strides = [1, 1, 1]} : vector<4x16x96xf32> to vector<4x16x8xf32>
    %108 = vector.extract_strided_slice %9 {offsets = [0, 0, 88], sizes = [4, 16, 8], strides = [1, 1, 1]} : vector<4x16x96xf32> to vector<4x16x8xf32>
    %109 = arith.truncf %106 : vector<4x16x8xf32> to vector<4x16x8xbf16>
    %110 = arith.truncf %107 : vector<4x16x8xf32> to vector<4x16x8xbf16>
    "tpu.trace_start"() <{level = 10 : i32, message = "wnd,wmd->wnm"}> : () -> ()
    %cst_45 = arith.constant dense<0.000000e+00> : vector<4x16x16xf32>
    %111 = tpu.matmul %109, %110, %cst_45 {dimension_numbers = #tpu.dot_dimension_numbers<[2], [2], [1], [1], [0, 0, 0, 1, 1, 1], [0], [0]>} : vector<4x16x8xbf16>, vector<4x16x8xbf16>, vector<4x16x16xf32> -> vector<4x16x16xf32>
    "tpu.trace_stop"() : () -> ()
    %c3 = arith.constant 3 : index
    %c0_46 = arith.constant 0 : index
    %c0_47 = arith.constant 0 : index
    %c0_48 = arith.constant 0 : index
    %112 = vector.load %arg6[%c3, %c0_46, %c0_47, %c0_48] : memref<4x4x16x16xf32, #tpu.memory_space<vmem>>, vector<1x4x16x16xf32>
    %113 = vector.shape_cast %112 : vector<1x4x16x16xf32> to vector<4x16x16xf32>
    %114 = arith.addf %111, %113 : vector<4x16x16xf32>
    %cst_49 = arith.constant dense<0xFF800000> : vector<4x16xf32>
    %115 = vector.multi_reduction <maximumf>, %114, %cst_49 [2] : vector<4x16x16xf32> to vector<4x16xf32>
    %116 = vector.shape_cast %115 : vector<4x16xf32> to vector<4x16x1xf32>
    %117 = vector.broadcast %116 : vector<4x16x1xf32> to vector<4x16x16xf32>
    %118 = arith.subf %114, %117 : vector<4x16x16xf32>
    %119 = math.exp %118 : vector<4x16x16xf32>
    %cst_50 = arith.constant dense<0.000000e+00> : vector<4x16xf32>
    %120 = vector.multi_reduction <add>, %119, %cst_50 [2] : vector<4x16x16xf32> to vector<4x16xf32>
    %121 = vector.shape_cast %120 : vector<4x16xf32> to vector<4x16x1xf32>
    %122 = tpu.reciprocal %121 {approx = true} : vector<4x16x1xf32> -> vector<4x16x1xf32>
    %123 = vector.broadcast %122 : vector<4x16x1xf32> to vector<4x16x16xf32>
    %124 = arith.mulf %119, %123 : vector<4x16x16xf32>
    %125 = arith.truncf %124 : vector<4x16x16xf32> to vector<4x16x16xbf16>
    %126 = arith.truncf %108 : vector<4x16x8xf32> to vector<4x16x8xbf16>
    "tpu.trace_start"() <{level = 10 : i32, message = "wnm,wmd->wnd"}> : () -> ()
    %cst_51 = arith.constant dense<0.000000e+00> : vector<4x16x8xf32>
    %127 = tpu.matmul %125, %126, %cst_51 {dimension_numbers = #tpu.dot_dimension_numbers<[2], [1], [1], [2], [0, 0, 0, 1, 1, 2], [0], [0]>} : vector<4x16x16xbf16>, vector<4x16x8xbf16>, vector<4x16x8xf32> -> vector<4x16x8xf32>
    "tpu.trace_stop"() : () -> ()
    %128 = vector.shape_cast %127 : vector<4x16x8xf32> to vector<64x8xf32>
    %129 = arith.truncf %128 : vector<64x8xf32> to vector<64x8xbf16>
    %c3_52 = arith.constant 3 : index
    %c0_53 = arith.constant 0 : index
    %c0_54 = arith.constant 0 : index
    %130 = vector.load %arg4[%c3_52, %c0_53, %c0_54] : memref<4x8x32xf32, #tpu.memory_space<vmem>>, vector<1x8x32xf32>
    %131 = vector.shape_cast %130 : vector<1x8x32xf32> to vector<8x32xf32>
    %132 = arith.truncf %131 : vector<8x32xf32> to vector<8x32xbf16>
    %cst_55 = arith.constant dense<0.000000e+00> : vector<64x32xf32>
    %133 = tpu.matmul %129, %132, %cst_55 {dimension_numbers = #tpu.dot_dimension_numbers<[1], [0], [0], [1], [0, 0, 1, 1], [], []>} : vector<64x8xbf16>, vector<8x32xbf16>, vector<64x32xf32> -> vector<64x32xf32>
    %134 = arith.addf %103, %133 : vector<64x32xf32>
    %c0_56 = arith.constant 0 : index
    %c0_57 = arith.constant 0 : index
    %135 = vector.load %arg5[%c0_56, %c0_57] : memref<1x32xf32, #tpu.memory_space<vmem>>, vector<1x32xf32>
    %136 = vector.broadcast %135 : vector<1x32xf32> to vector<64x32xf32>
    %137 = arith.addf %134, %136 : vector<64x32xf32>
    %138 = vector.shape_cast %137 : vector<64x32xf32> to vector<4x16x32xf32>
    %c0_58 = arith.constant 0 : index
    %c0_59 = arith.constant 0 : index
    %c0_60 = arith.constant 0 : index
    %139 = vector.load %arg7[%c0_58, %c0_59, %c0_60] : memref<4x16x32xf32, #tpu.memory_space<vmem>>, vector<4x16x32xf32>
    tpu.vector_store %arg7[%c0_58, %c0_59, %c0_60], %138 {strides = array<i32>} : memref<4x16x32xf32, #tpu.memory_space<vmem>>, vector<4x16x32xf32>,
    return
  }
  func.func @transform_0(%arg0: i32) -> (i32, i32, i32) {
    %c0_i32 = arith.constant 0 : i32
    %c0_i32_0 = arith.constant 0 : i32
    %c0_i32_1 = arith.constant 0 : i32
    return %arg0, %c0_i32, %c0_i32_0 : i32, i32, i32
  }
  func.func @transform_1(%arg0: i32) -> (i32, i32) {
    %c0_i32 = arith.constant 0 : i32
    %c0_i32_0 = arith.constant 0 : i32
    %c0_i32_1 = arith.constant 0 : i32
    return %c0_i32, %c0_i32_0 : i32, i32
  }
  func.func @transform_2(%arg0: i32) -> (i32, i32) {
    %c0_i32 = arith.constant 0 : i32
    %c0_i32_0 = arith.constant 0 : i32
    %c0_i32_1 = arith.constant 0 : i32
    return %c0_i32, %c0_i32_0 : i32, i32
  }
  func.func @transform_3(%arg0: i32) -> (i32, i32, i32) {
    %c0_i32 = arith.constant 0 : i32
    %c0_i32_0 = arith.constant 0 : i32
    %c0_i32_1 = arith.constant 0 : i32
    %c0_i32_2 = arith.constant 0 : i32
    return %c0_i32, %c0_i32_0, %c0_i32_1 : i32, i32, i32
  }
  func.func @transform_4(%arg0: i32) -> (i32, i32) {
    %c0_i32 = arith.constant 0 : i32
    %c0_i32_0 = arith.constant 0 : i32
    %c0_i32_1 = arith.constant 0 : i32
    return %c0_i32, %c0_i32_0 : i32, i32
  }
  func.func @transform_5(%arg0: i32) -> (i32, i32, i32, i32) {
    %c0_i32 = arith.constant 0 : i32
    %c0_i32_0 = arith.constant 0 : i32
    %c0_i32_1 = arith.constant 0 : i32
    %c0_i32_2 = arith.constant 0 : i32
    %c0_i32_3 = arith.constant 0 : i32
    return %c0_i32, %c0_i32_0, %c0_i32_1, %c0_i32_2 : i32, i32, i32, i32
  }
  func.func @transform_6(%arg0: i32) -> (i32, i32, i32) {
    %c0_i32 = arith.constant 0 : i32
    %c0_i32_0 = arith.constant 0 : i32
    %c0_i32_1 = arith.constant 0 : i32
    return %arg0, %c0_i32, %c0_i32_0 : i32, i32, i32
  }
}

</mosaic_0001>

<bundles_post_ra>
// kernel: tpu_custom_call.1
= control target key start
LH: loop header
LB: loop body
LE: loop exit
PB: predicated region body
PF: predicated region fallthrough
CT: control target
= control target key end

     0   :  { %11 = vsyncpa [#allocation3], 0  ;;  %s4533_s0 = inlined_call_operand.hbm [shape: f32[8,16,32], index: 0, kind: input, shape index: {}]   ;;  %s4534_s1 = inlined_call_operand.hbm [shape: f32[32,96], index: 1, kind: input, shape index: {}]   ;;  %s4535_s2 = inlined_call_operand.vmem [shape: f32[1,96], index: 2, kind: input, shape index: {}]   ;;  %s4536_s3 = inlined_call_operand.hbm [shape: f32[4,8,32], index: 3, kind: input, shape index: {}]   ;;  %s4537_s4 = inlined_call_operand.vmem [shape: f32[1,32], index: 4, kind: input, shape index: {}]   ;;  %s4538_s5 = inlined_call_operand.hbm [shape: f32[4,4,16,16], index: 5, kind: input, shape index: {}]   ;;  %s4539_s6 = inlined_call_operand.hbm [shape: f32[8,16,32], index: 6, kind: output, shape index: {}]  }
   0x1   :  { %13 = vsyncpa [#allocation3 + $0x1], 0 }
   0x2   :  { %14 = vsyncpa [#allocation6], 0 }
   0x3   :  { %15 = vsyncpa [#allocation9], 0 }
   0x4   :  { %16 = vsyncpa [#allocation4], 0 }
   0x5   :  { %18 = vsyncpa [#allocation4 + $0x1], 0  ;;  %s3795_s21 = smov 0   ;;  %s3797_s22 = smov 0  }
   0x6   :  { %s3799_s23 = smov 0   ;;  %s3801_s24 = smov 0  }
   0x7 LB: > { %s3816_s25 = sadd.s32 4294967295, %s3736_s24   ;;  %s2914_s26 = sadd.s32 4294967294, %s3736_s24   ;;  %s3736_s24 = sphi %s3801_s24, %s4566_s24   ;;  %s3732_s23 = sphi %s3799_s23, %s4565_s23   ;;  %s3728_s22 = sphi %s3797_s22, %s4564_s22   ;;  %s3724_s21 = sphi %s3795_s21, %s4563_s21  }
   0x8   : > { %p44_p0 = scmp.ne.s32.totalorder %s3728_s22, %s3724_s21  ;;  %p4540_p1 = scmp.eq.s32.totalorder %s3816_s25, 0 }
   0x9   : > { %p173_p2 = scmp.eq.s32.totalorder %s3816_s25, 1  ;;  %p179_p3 = scmp.eq.s32.totalorder %s2914_s26, 1 }
   0xa   : > { %p3825_p4 = por %p4540_p1, %p44_p0  ;;  %p2915_p5 = scmp.ge.s32.totalorder %s3736_s24, 1 }
   0xb   : > { %p3830_p6 = por %p179_p3, %p44_p0  ;;  %p186_p7 = scmp.lt.s32.totalorder %s3736_s24, 3 }
   0xc   : > { %s4546_s27 = scalar_select %p3825_p4, 1, 0 }
   0xd   : > { %s4547_s28 = scalar_select %p3830_p6, 1, 0 }
   0xe   : > { %p3835_p8 = pnand %p2915_p5, %p186_p7  ;;  %s3738_s30 = smov [#allocation5]  }
   0xf   : > { %s198_s7 = sshll.u32 %s3738_s30, 4  ;;  %s3739_s9 = smov [#allocation7]   ;;  %s199_s7 = int_to_ptr.vmem [resolvable:$true] %s198_s7 }
  0x10   : > { %s4548_s29 = scalar_select %p3835_p8, 1, 0 }
  0x11   : > { %p3352_p9 = pneg %p3835_p8  ;;  %s214_s10 = sshll.u32 %s3739_s9, 4  ;;  %s215_s10 = int_to_ptr.vmem [resolvable:$true] %s214_s10 }
  0x12   : > { %s3740_s11 = smov [#allocation8]   ;;  %s3569_s13 = scalar_lea.vmem %s199_s7, 512 }
  0x13   : > { %p3844_p11 = pnand %p3352_p9, %p4540_p1  ;;  %s230_s12 = sshll.u32 %s3740_s11, 4  ;;  %s231_s12 = int_to_ptr.vmem [resolvable:$true] %s230_s12 }
  0x14   : > { %p3570_p13 = scmp.ne.s32.totalorder %s199_s7, %s3569_s13  ;;  %p3577_p5 = scmp.lt.s32.totalorder %s199_s7, %s199_s7 }
  0x15   : > { %p3560_p12 = pneg %p3844_p11  ;;  %p3578_p7 = scmp.lt.s32.totalorder %s3569_s13, %s3569_s13 }
  0x17   : > { %p3572_p0 = pnand %p3570_p13, %p3560_p12  ;;  %p3579_p9 = por %p3578_p7, %p3577_p5 }
  0x19   : > { %p3573_p3 = pneg %p3572_p0 }
  0x1b   : > { %p3580_p10 = pnand %p3579_p9, %p3573_p3 }
  0x1d   : > { %3583 = shalt.err (!%p3580_p10)
}
  0x1e   : > { %s4541_s14 = smov 128   ;;  %s4542_s15 = smov 8  }
  0x1f   : > { %3355 = dma.hbm_to_vmem [thread:$0]  (!%p3844_p11), %s4534_s1, 512, %s199_s7, [#allocation6], %s4541_s14, %s4541_s14, %s4542_s15  }
  0x20   : > { %s3595_s18 = scalar_lea.vmem %s215_s10, 512  ;;  %p3603_p3 = scmp.lt.s32.totalorder %s215_s10, %s215_s10 }
  0x21   : > { %p3596_p13 = scmp.ne.s32.totalorder %s215_s10, %s3595_s18  ;;  %p3604_p10 = scmp.lt.s32.totalorder %s3595_s18, %s3595_s18 }
  0x23   : > { %p3598_p0 = pnand %p3596_p13, %p3560_p12  ;;  %p3605_p7 = por %p3604_p10, %p3603_p3 }
  0x25   : > { %p3599_p5 = pneg %p3598_p0 }
  0x27   : > { %p3606_p9 = pnand %p3605_p7, %p3599_p5 }
  0x29   : > { %3609 = shalt.err (!%p3606_p9)
}
  0x2a   : > { %3358 = dma.hbm_to_vmem [thread:$0]  (!%p3844_p11), %s4536_s3, 512, %s215_s10, [#allocation6], %s4541_s14, %s4541_s14, %s4542_s15  }
  0x2b   : > { %s3621_s26 = scalar_lea.vmem %s231_s12, 4096  ;;  %p3629_p3 = scmp.lt.s32.totalorder %s231_s12, %s231_s12 }
  0x2c   : > { %p3622_p1 = scmp.ne.s32.totalorder %s231_s12, %s3621_s26  ;;  %p3630_p5 = scmp.lt.s32.totalorder %s3621_s26, %s3621_s26 }
  0x2e   : > { %p3624_p13 = pnand %p3622_p1, %p3560_p12  ;;  %p3631_p10 = por %p3630_p5, %p3629_p3 }
  0x30   : > { %p3625_p0 = pneg %p3624_p13 }
  0x32   : > { %p3632_p7 = pnand %p3631_p10, %p3625_p0 }
  0x34   : > { %3635 = shalt.err (!%p3632_p7)
}
  0x35   : > { %3361 = dma.hbm_to_vmem [thread:$0]  (!%p3844_p11), %s4538_s5, 4096, %s231_s12, [#allocation9], %s4541_s14, %s4541_s14, %s4542_s15  }
  0x36   : > { %s3884_s9 = sadd.s32 1, %s3736_s24   ;;  %s31_s10 = sadd.s32 1, %s3732_s23 }
  0x37   : > { %s28_s8 = ssub.s32 %s3736_s24, %s3884_s9  ;;  %p38_p12 = scmp.ne.s32.totalorder %s3732_s23, %s3728_s22 }
  0x38   : > { %p29_p1 = scmp.eq.s32.totalorder %s28_s8, 0  ;;  %p39_p9 = scmp.eq.s32.totalorder %s3736_s24, 0 }
  0x39   : > { %p3373_p13 = scmp.lt.s32.totalorder %s3736_s24, 2  ;;  %p3898_p3 = por %p173_p2, %p38_p12 }
  0x3a   : > { %s3894_s11 = scalar_select %p29_p1, %s3732_s23, %s31_s10  }
  0x3b   : > { %p40_p0 = por %p39_p9, %p38_p12  ;;  %s244_s16 = sand.u32 1, %s3732_s23  }
  0x3c   : > { %s4550_s13 = scalar_select %p3898_p3, 1, 0 }
  0x3d   : > { %s2991_s17 = sshll.u32 %s3736_s24, 10  ;;  %s2920_s12 = sshll.u32 %s244_s16, 6 }
  0x3e   : > { %s3907_s20 = scalar_lea.hbm %s4533_s0, %s2991_s17  ;;  %s248_s26 = scalar_lea.vmem [#allocation2], %s2920_s12 }
  0x3f   : > { %s256_s30 = sshll.u32 %s248_s26, 4  ;;  %p3909_p11 = pnand %p3373_p13, %p40_p0  ;;  %s3913_s30 = int_to_ptr.vmem [resolvable:$true] %s256_s30 }
  0x40   : > { %s3915_s8 = scalar_lea.sflag [#allocation3], %s244_s16  ;;  %s3636_s10 = scalar_lea.hbm %s3907_s20, 1024 }
  0x41   : > { %p3637_p2 = scmp.ne.s32.totalorder %s3907_s20, %s3636_s10  ;;  %p3638_p5 = pneg %p3909_p11 }
  0x42   : > { %s3641_s12 = scalar_lea.hbm %s4533_s0, 2048  ;;  %p3642_p1 = scmp.lt.s32.totalorder %s3907_s20, %s4533_s0 }
  0x43   : > { %p3639_p10 = pnand %p3638_p5, %p3637_p2  ;;  %p3643_p12 = scmp.lt.s32.totalorder %s3641_s12, %s3636_s10 }
  0x45   : > { %p3640_p7 = pneg %p3639_p10  ;;  %p3644_p9 = por %p3643_p12, %p3642_p1 }
  0x47   : > { %p3645_p13 = pnand %p3644_p9, %p3640_p7 }
  0x49   : > { %3648 = shalt.err (!%p3645_p13)
}
  0x4a   : > { %s3649_s16 = scalar_lea.vmem %s3913_s30, 1024  ;;  %s3743_s14 = smov [#allocation2]  }
  0x4b   : > { %p3650_p0 = scmp.ne.s32.totalorder %s3913_s30, %s3649_s16  ;;  %s3654_s15 = sshll.u32 %s3743_s14, 4  ;;  %s3655_s15 = int_to_ptr.vmem [resolvable:$false] %s3654_s15 }
  0x4c   : > { %s3656_s17 = scalar_lea.vmem %s3655_s15, 2048  ;;  %p3657_p10 = scmp.lt.s32.totalorder %s3913_s30, %s3655_s15 }
  0x4d   : > { %p3652_p6 = pnand %p3650_p0, %p3638_p5  ;;  %p3658_p3 = scmp.lt.s32.totalorder %s3656_s17, %s3649_s16 }
  0x4f   : > { %p3653_p2 = pneg %p3652_p6  ;;  %p3659_p4 = por %p3658_p3, %p3657_p10 }
  0x51   : > { %p3660_p8 = pnand %p3659_p4, %p3653_p2 }
  0x53   : > { %3663 = shalt.err (!%p3660_p8)
}
  0x54   : > { %s4552_s10 = smov 8   ;;  %s4553_s18 = smov 128  }
  0x55   : > { %3365 = dma.hbm_to_vmem [thread:$0]  (!%p3909_p11), %s3907_s20, 1024, %s3913_s30, %s3915_s8, %s4553_s18, %s4553_s18, %s4552_s10  }
  0x56   : > { %p4554_p6 = scmp.ne.s32.totalorder %s4548_s29, 0 }
  0x57   : > { %s3942_s14 = sand.u32 (!%p4554_p6), 1, %s3728_s22   ;;  %p4555_p4 = scmp.ne.s32.totalorder (!%p4554_p6), %s4546_s27, 0 }
  0x58   : > { %268 = sbr.rel (%p4554_p6) target bundleno = 3530 (0xdca), region = 44  ;;  %s2925_s15 = sshll.u32 (!%p4554_p6), %s3942_s14, 6 }
  0x59   : > { %s271_s12 = scalar_lea.sflag (!%p4554_p6), [#allocation3], %s3942_s14  ;;  %s274_s7 = scalar_lea.vmem (!%p4554_p6), [#allocation2], %s2925_s15 }
  0x5d   : > { %3707 = dma.done.wait (%p4555_p4), %s271_s12, 1024  }
  0x5e   : > { %3709 = vsyncadd (%p4555_p4), %s271_s12, 4294966272  ;;  %p4556_p8 = scmp.eq.s32.totalorder %s3816_s25, 0 }
  0x60   : > { %3711 = dma.done.wait (%p4556_p8), [#allocation6], 1024   ;;  %p4557_p3 = pmov %p4556_p8 }
  0x62   : > { %3713 = vsyncadd (%p4557_p3), [#allocation6], 4294966272  ;;  %p4558_p11 = pmov %p4557_p3 }
  0x63   : > { %p4559_p5 = pmov %p4557_p3 }
  0x64   : > { %3715 = dma.done.wait (%p4558_p11), [#allocation9], 4096  }
  0x65   : > { %3717 = vsyncadd (%p4559_p5), [#allocation9], 4294963200  ;;  %v332_v0 = vld [vmem:[#allocation5 + $0x10] sm:$0xff]  ;;  %v333_v1 = vld [vmem:[#allocation5 + $0x18] sm:$0xff]  ;;  %vm343_vm0 = vcmask 261120   ;;  %v3744_v18 = vmov 0.0  }
  0x66   : > { %v330_v2 = vld [vmem:[#allocation5] sm:$0xff]  ;;  %v335_v3 = vpack.c.bf16 %v333_v1, %v332_v0  ;;  %v331_v4 = vld [vmem:[#allocation5 + $0x8] sm:$0xff]  ;;  %v320_v12 = vld [vmem:[%s274_s7 + $0x10] sm:$0xff]  ;;  %vm3745_vm1 = vmmov 0   ;;  %s3746_s20 = smov 96   ;;  %vm448_vm2 = vcmask 64512  }
  0x67   : > { %v318_v5 = vld [vmem:[%s274_s7] sm:$0xff]  ;;  %v319_v6 = vld [vmem:[%s274_s7 + $0x8] sm:$0xff]  ;;  %v334_v7 = vpack.c.bf16 %v331_v4, %v330_v2  ;;  %v321_v13 = vld [vmem:[%s274_s7 + $0x18] sm:$0xff]  ;;  %vm646_vm3 = vcmask 130048   ;;  %s3747_s30 = smov 64   ;;  %s3748_s8 = smov 88  }
  0x68   : > { %v326_v8 = vpack.c.bf16 %v319_v6, %v318_v5  ;;  %v322_v9 = vld [vmem:[%s274_s7 + $0x20] sm:$0xff]  ;;  %v323_v10 = vld [vmem:[%s274_s7 + $0x28] sm:$0xff]  ;;  %3084 = vmatprep.subr.bf16.mxu0 %v335_v3  ;;  %3328 = vmatprep.subr.bf16.mxu1 %v335_v3  ;;  %v324_v14 = vld [vmem:[%s274_s7 + $0x30] sm:$0xff]  ;;  %v327_v16 = vpack.c.bf16 %v321_v13, %v320_v12  ;;  %s3749_s19 = smov 120   ;;  %s3750_s26 = smov 56   ;;  %vm1449_vm4 = vcmask 1043456  }
  0x69   : > { %v328_v11 = vpack.c.bf16 %v323_v10, %v322_v9  ;;  %3085 = vmatpush3.bf16.msra.mxu0 %v335_v3  ;;  %3330 = vmatpush3.bf16.msra.mxu1 %v335_v3  ;;  %v325_v15 = vld [vmem:[%s274_s7 + $0x38] sm:$0xff]  ;;  %v2930_v20 = vld [vmem:[%s4535_s2] ss:$0 sm:$0xff]  ;;  %v438_v4 = vld [vmem:[#allocation8 + $0x8] sm:$0xff]  ;;  %s3751_s16 = smov 80   ;;  %s3752_s17 = smov 112  }
  0x6a   : > { %3086 = vmatprep.subr.bf16.mxu0 %v334_v7  ;;  %3329 = vmatprep.subr.bf16.mxu1 %v334_v7  ;;  %v329_v17 = vpack.c.bf16 %v325_v15, %v324_v14  ;;  %v437_v60 = vld [vmem:[#allocation8] sm:$0xff]  ;;  %v439_v12 = vld [vmem:[#allocation8 + $0x10] sm:$0xff]  ;;  %s3753_s10 = smov 48   ;;  %s3754_s18 = smov 72  }
  0x6b   : > { %3088 = vmatprep.mubr.msk.bf16.mxu0 %vm343_vm0, %v326_v8  ;;  %3092 = vmatprep.mubr.msk.bf16.mxu1 %vm343_vm0, %v328_v11  ;;  %v441_v61 = vld [vmem:[#allocation8 + $0x20] sm:$0xff]  ;;  %s3755_s12 = smov 104   ;;  %s3756_s7 = smov 40  }
  0x6c   : > { %p4560_p1 = scmp.ne.s32.totalorder %s4550_s13, 0 }
  0x6d   : > { %3087 = vmatpush3.bf16.msra.mxu0 %v334_v7  ;;  %3331 = vmatpush3.bf16.msra.mxu1 %v334_v7 }
  0x6e   : > { %3096 = vmatprep.subr.bf16.mxu1 %v3744_v18  ;;  %3108 = vmatprep.subr.bf16.mxu0 %v3744_v18 }
  0x70   : > { %3089 = vmatmul.mubr.msk.bf16.vlgmr.msra.gmra.mxu0 %vm343_vm0, %v327_v16  ;;  %3093 = vmatmul.mubr.msk.bf16.vlgmr.msra.gmra.mxu1 %vm343_vm0, %v329_v17  ;;  %v440_v17 = vld [vmem:[#allocation8 + $0x18] sm:$0xff] }
  0x71   : > { %3098 = vmatprep.mubr.msk.bf16.mxu1 %vm3745_vm1, %v3744_v18  ;;  %3110 = vmatprep.mubr.msk.bf16.mxu0 %vm3745_vm1, %v3744_v18 }
 0x130   : > { %v3090_v19 = vpop.f32.mrf.mxu0  ;;  %v3094_v21 = vpop.f32.mrf.mxu1 }
 0x131   : > { %v415_v22 = vadd.f32 %v3094_v21, %v2930_v20  ;;  %v399_v25 = vadd.f32 %v3090_v19, %v2930_v20 }
 0x132   : > { %v390_v23 = vpop.f32.mrf.mxu0  ;;  %v406_v24 = vpop.f32.mrf.mxu1 }
 0x133   : > { %v427_v28 = vmul.f32 0.35355338, %v415_v22  ;;  %v391_v29 = vadd.f32 %v2930_v20, %v390_v23  ;;  %v407_v32 = vadd.f32 %v2930_v20, %v406_v24  ;;  %v423_v35 = vmul.f32 0.35355338, %v399_v25  ;;  %v443_v24 = vld [vmem:[#allocation8 + $0x30] sm:$0xff] }
 0x134   : > { %v3091_v26 = vpop.f32.mrf.mxu0  ;;  %v3095_v27 = vpop.f32.mrf.mxu1 }
 0x135   : > { %v402_v30 = vadd.f32 %v3091_v26, %v2930_v20  ;;  %v418_v31 = vadd.f32 %v3095_v27, %v2930_v20  ;;  %v425_v38 = vmul.f32 0.35355338, %v407_v32  ;;  %v421_v41 = vmul.f32 0.35355338, %v391_v29 }
 0x136   : > { %v393_v33 = vpop.f32.mrf.mxu0  ;;  %v409_v34 = vpop.f32.mrf.mxu1 }
 0x137   : > { %v424_v36 = vmul.f32 0.35355338, %v402_v30  ;;  %v428_v37 = vmul.f32 0.35355338, %v418_v31  ;;  %v394_v39 = vadd.f32 %v2930_v20, %v393_v33  ;;  %v410_v40 = vadd.f32 %v2930_v20, %v409_v34  ;;  %v442_v20 = vld [vmem:[#allocation8 + $0x28] sm:$0xff] }
 0x138   : > { %v3987_v50 = vpack.c.bf16 %v402_v30, %v399_v25  ;;  %v3989_v51 = vpack.c.bf16 %v418_v31, %v415_v22  ;;  %v444_v30 = vld [vmem:[#allocation8 + $0x38] sm:$0xff] }
 0x139   : > { %v3973_v42 = vpack.c.bf16 %v424_v36, %v423_v35  ;;  %v3975_v43 = vpack.c.bf16 %v428_v37, %v427_v28  ;;  %v422_v44 = vmul.f32 0.35355338, %v394_v39  ;;  %v3977_v45 = vpack.c.bf16 %v394_v39, %v391_v29 }
 0x13a   : > { %v426_v46 = vmul.f32 0.35355338, %v410_v40  ;;  %v3979_v47 = vpack.c.bf16 %v410_v40, %v407_v32 }
 0x13b   : > { %v3981_v48 = vpack.c.bf16 %v422_v44, %v421_v41  ;;  %446 = vrot.lane.b32.xlu0 %v3977_v45, %s3746_s20 }
 0x13c   : > { %v3983_v49 = vpack.c.bf16 %v426_v46, %v425_v38  ;;  %547 = vrot.lane.b32.xlu1 %v3979_v47, %s3746_s20 }
 0x13f   : > { %497 = vrot.lane.b32.xlu0 %v3987_v50, %s3746_s20 }
 0x140   : > { %597 = vrot.lane.b32.xlu1 %v3989_v51, %s3746_s20  ;;  %s314_s20 = scalar_lea.vmem [#allocation10], %s2925_s15  ;;  %s2993_s15 = sshll.u32 %s3816_s25, 10 }
 0x141   : > { %s2798_s25 = scalar_lea.sflag [#allocation4], %s3942_s14 }
 0x1ad   : > { %v447_v53 = vpop.permute.xlu0 %446 }
 0x1ae   : > { %v548_v52 = vpop.permute.xlu1 %547  ;;  %v453_v55 = vsel %vm448_vm2, %v447_v53, 0 }
 0x1af   : > { %v553_v54 = vsel %vm448_vm2, %v548_v52, 0  ;;  %3097 = vmatpush3.bf16.xpose.msra.mxu1 %v453_v55 }
 0x1b0   : > { %3109 = vmatpush3.bf16.xpose.msra.mxu0 %v553_v54  ;;  %3102 = vmatprep.subr.bf16.mxu1 %v3744_v18 }
 0x1b1   : > { %3120 = vmatprep.subr.bf16.mxu0 %v3744_v18  ;;  %v498_v56 = vpop.permute.xlu0 %497 }
 0x1b2   : > { %v503_v57 = vsel %vm448_vm2, %v498_v56, 0  ;;  %v598_v58 = vpop.permute.xlu1 %597 }
 0x1b3   : > { %v603_v59 = vsel %vm448_vm2, %v598_v58, 0 }
 0x1b6   : > { %3099 = vmatmul.mubr.msk.bf16.vlgmr.msra.gmra.mxu1 %vm448_vm2, %v3981_v48 }
 0x1b7   : > { %3111 = vmatmul.mubr.msk.bf16.vlgmr.msra.gmra.mxu0 %vm448_vm2, %v3983_v49  ;;  %3103 = vmatpush3.bf16.xpose.msra.mxu1 %v503_v57 }
 0x1b8   : > { %3104 = vmatprep.mubr.msk.bf16.mxu1 %vm3745_vm1, %v3744_v18  ;;  %3114 = vmatprep.subr.bf16.mxu1 %v3744_v18 }
 0x1b9   : > { %3122 = vmatprep.mubr.msk.bf16.mxu0 %vm3745_vm1, %v3744_v18 }
 0x1be   : > { %3105 = vmatmul.mubr.msk.bf16.vlgmr.msra.gmra.mxu1 %vm448_vm2, %v3973_v42 }
 0x1bf   : > { %3115 = vmatpush3.bf16.xpose.msra.mxu1 %v603_v59  ;;  %3116 = vmatprep.mubr.msk.bf16.mxu1 %vm3745_vm1, %v3744_v18 }
 0x1c0   : > { %3126 = vmatprep.subr.bf16.mxu1 %v3744_v18 }
 0x1c6   : > { %3117 = vmatmul.mubr.msk.bf16.vlgmr.msra.gmra.mxu1 %vm448_vm2, %v3975_v43 }
 0x1c7   : > { %3128 = vmatprep.mubr.msk.bf16.mxu1 %vm3745_vm1, %v3744_v18 }
 0x276   : > { %v489_v62 = vpop.f32.mrf.mxu1 }
 0x277   : > { %v589_v63 = vpop.f32.mrf.mxu0  ;;  %v490_v0 = vadd.f32 %v489_v62, %v437_v60 }
 0x278   : > { %v590_v1 = vadd.f32 %v589_v63, %v441_v61  ;;  %v3100_v2 = vpop.f32.mrf.mxu1 }
 0x279   : > { %v3112_v3 = vpop.f32.mrf.mxu0  ;;  %v647_v6 = vsel %vm646_vm3, %v490_v0, -inf }
 0x27a   : > { %v659_v5 = vsel %vm646_vm3, %v590_v1, -inf  ;;  %648 = vmax.xlane.f32.xlu0 %v647_v6  ;;  %v492_v8 = vpop.f32.mrf.mxu1 }
 0x27b   : > { %660 = vmax.xlane.f32.xlu1 %v659_v5  ;;  %v592_v7 = vpop.f32.mrf.mxu0  ;;  %v493_v9 = vadd.f32 %v492_v8, %v438_v4 }
 0x27c   : > { %v3101_v10 = vpop.f32.mrf.mxu1  ;;  %v593_v25 = vadd.f32 %v592_v7, %v442_v20 }
 0x27d   : > { %v3113_v11 = vpop.f32.mrf.mxu0  ;;  %v650_v13 = vsel %vm646_vm3, %v493_v9, -inf }
 0x27e   : > { %v539_v14 = vpop.f32.mrf.mxu1  ;;  %v662_v31 = vsel %vm646_vm3, %v593_v25, -inf }
 0x27f   : > { %651 = vmax.xlane.f32.xlu1 %v650_v13  ;;  %v540_v15 = vadd.f32 %v539_v14, %v439_v12 }
 0x280   : > { %v3106_v16 = vpop.f32.mrf.mxu1 }
 0x281   : > { %v653_v19 = vsel %vm646_vm3, %v540_v15, -inf }
 0x282   : > { %654 = vmax.xlane.f32.xlu0 %v653_v19  ;;  %v542_v21 = vpop.f32.mrf.mxu1 }
 0x283   : > { %v543_v22 = vadd.f32 %v542_v21, %v440_v17 }
 0x284   : > { %v3107_v23 = vpop.f32.mrf.mxu1 }
 0x285   : > { %v656_v26 = vsel %vm646_vm3, %v543_v22, -inf }
 0x286   : > { %657 = vmax.xlane.f32.xlu0 %v656_v26  ;;  %v639_v27 = vpop.f32.mrf.mxu1 }
 0x287   : > { %v4022_v28 = vadd.f32 %v639_v27, %v443_v24 }
 0x288   : > { %v3118_v29 = vpop.f32.mrf.mxu1 }
 0x289   : > { %v665_v32 = vsel %vm646_vm3, %v4022_v28, -inf }
 0x28a   : > { %663 = vmax.xlane.f32.xlu0 %v662_v31  ;;  %666 = vmax.xlane.f32.xlu1 %v665_v32  ;;  %v642_v33 = vpop.f32.mrf.mxu1 }
 0x28b   : > { %v643_v34 = vadd.f32 %v642_v33, %v444_v30 }
 0x28c   : > { %v3119_v35 = vpop.f32.mrf.mxu1 }
 0x28d   : > { %v668_v36 = vsel %vm646_vm3, %v643_v34, -inf }
 0x28e   : > { %669 = vmax.xlane.f32.xlu0 %v668_v36 }
 0x29b   : > { %739 = vrot.lane.b32.xlu1 %v3977_v45, %s3747_s30 }
 0x303   : > { %v649_v38 = vpop.xlane.xlu0 %648 }
 0x304   : > { %v661_v37 = vpop.xlane.xlu1 %660  ;;  %v671_v40 = vsub.f32 %v490_v0, %v649_v38 }
 0x305   : > { %v675_v39 = vsub.f32 %v590_v1, %v661_v37 }
 0x306   : > { %v679_v41 = vmul.f32 1.442695, %v671_v40 }
 0x307   : > { %v687_v44 = vmul.f32 1.442695, %v675_v39 }
 0x308   : > { %v652_v46 = vpop.xlane.xlu1 %651  ;;  %3430 = vpow2.f32 %v679_v41 }
 0x309   : > { %v672_v52 = vsub.f32 %v493_v9, %v652_v46  ;;  %3432 = vpow2.f32 %v687_v44 }
 0x30b   : > { %v681_v53 = vmul.f32 1.442695, %v672_v52  ;;  %v655_v54 = vpop.xlane.xlu0 %654 }
 0x30c   : > { %v673_v55 = vsub.f32 %v540_v15, %v655_v54 }
 0x30d   : > { %3434 = vpow2.f32 %v681_v53 }
 0x30e   : > { %v683_v56 = vmul.f32 1.442695, %v673_v55 }
 0x30f   : > { %v658_v57 = vpop.xlane.xlu0 %657 }
 0x310   : > { %3436 = vpow2.f32 %v683_v56  ;;  %v674_v58 = vsub.f32 %v543_v22, %v658_v57 }
 0x312   : > { %v685_v63 = vmul.f32 1.442695, %v674_v58 }
 0x313   : > { %v664_v59 = vpop.xlane.xlu0 %663  ;;  %v667_v60 = vpop.xlane.xlu1 %666 }
 0x314   : > { %v676_v61 = vsub.f32 %v593_v25, %v664_v59  ;;  %v677_v13 = vsub.f32 %v4022_v28, %v667_v60 }
 0x315   : > { %v4030_v62 = vpop.eup %3430 }
 0x316   : > { %v689_v0 = vmul.f32 1.442695, %v676_v61  ;;  %v695_v1 = vsel %vm646_vm3, %v4030_v62, 0.0  ;;  %v4034_v3 = vpop.eup %3432  ;;  %v691_v14 = vmul.f32 1.442695, %v677_v13 }
 0x317   : > { %v740_v2 = vpop.permute.xlu1 %739  ;;  %696 = vadd.xlane.f32.xlu1 %v695_v1  ;;  %v707_v6 = vsel %vm646_vm3, %v4034_v3, 0.0  ;;  %v670_v15 = vpop.xlane.xlu0 %669 }
 0x318   : > { %3438 = vpow2.f32 %v689_v0  ;;  %3121 = vmatpush3.bf16.msra.mxu0 %v740_v2  ;;  %v678_v16 = vsub.f32 %v643_v34, %v670_v15 }
 0x319   : > { %3132 = vmatprep.subr.bf16.mxu0 %v3744_v18  ;;  %3440 = vpow2.f32 %v685_v63 }
 0x31a   : > { %v3435_v4 = vpop.eup %3434  ;;  %3442 = vpow2.f32 %v691_v14  ;;  %v693_v17 = vmul.f32 1.442695, %v678_v16 }
 0x31b   : > { %v698_v5 = vsel %vm646_vm3, %v3435_v4, 0.0  ;;  %708 = vadd.xlane.f32.xlu1 %v707_v6 }
 0x31c   : > { %699 = vadd.xlane.f32.xlu0 %v698_v5  ;;  %3444 = vpow2.f32 %v693_v17 }
 0x31d   : > { %v4040_v7 = vpop.eup %3436 }
 0x31e   : > { %v701_v8 = vsel %vm646_vm3, %v4040_v7, 0.0 }
 0x31f   : > { %702 = vadd.xlane.f32.xlu1 %v701_v8 }
 0x325   : > { %v3439_v9 = vpop.eup %3438 }
 0x326   : > { %v710_v10 = vsel %vm646_vm3, %v3439_v9, 0.0  ;;  %v4045_v11 = vpop.eup %3440 }
 0x327   : > { %711 = vadd.xlane.f32.xlu0 %v710_v10  ;;  %v704_v12 = vsel %vm646_vm3, %v4045_v11, 0.0  ;;  %v4056_v19 = vpop.eup %3442 }
 0x328   : > { %v713_v20 = vsel %vm646_vm3, %v4056_v19, 0.0 }
 0x329   : > { %v4060_v21 = vpop.eup %3444 }
 0x32a   : > { %v716_v22 = vsel %vm646_vm3, %v4060_v21, 0.0 }
 0x32b   : > { %705 = vadd.xlane.f32.xlu0 %v704_v12 }
 0x330   : > { %833 = vrot.lane.b32.xlu1 %v3979_v47, %s3747_s30 }
 0x334   : > { %880 = vrot.lane.b32.xlu1 %v3989_v51, %s3747_s30 }
 0x341   : > { %786 = vrot.lane.b32.xlu0 %v3987_v50, %s3747_s30  ;;  %s2812_s30 = sshll.u32 %s314_s20, 4  ;;  %s4488_s30 = int_to_ptr.vmem [resolvable:$true] %s2812_s30 }
 0x358   : > { %714 = vadd.xlane.f32.xlu1 %v713_v20 }
 0x360   : > { %717 = vadd.xlane.f32.xlu0 %v716_v22 }
 0x369   : > { %997 = vrot.lane.b32.xlu1 %v3987_v50, %s3748_s8 }
 0x36d   : > { %1049 = vrot.lane.b32.xlu1 %v3979_v47, %s3748_s8 }
 0x371   : > { %1101 = vrot.lane.b32.xlu1 %v3989_v51, %s3748_s8 }
 0x375   : > { %1099 = vrot.lane.b32.xlu1 %v3975_v43, %s3749_s19 }
 0x376   : > { %945 = vrot.lane.b32.xlu0 %v3977_v45, %s3748_s8 }
 0x37a   : > { %943 = vrot.lane.b32.xlu0 %v3981_v48, %s3749_s19 }
 0x37e   : > { %995 = vrot.lane.b32.xlu0 %v3973_v42, %s3749_s19 }
 0x382   : > { %1047 = vrot.lane.b32.xlu0 %v3983_v49, %s3749_s19 }
 0x3a0   : > { %v697_v23 = vpop.xlane.xlu1 %696 }
 0x3a1   : > { %3446 = vrcp.f32 %v697_v23 }
 0x3a4   : > { %v709_v25 = vpop.xlane.xlu1 %708 }
 0x3a5   : > { %v700_v24 = vpop.xlane.xlu0 %699 }
 0x3a6   : > { %3448 = vrcp.f32 %v700_v24 }
 0x3a7   : > { %3450 = vrcp.f32 %v709_v25 }
 0x3a8   : > { %v703_v27 = vpop.xlane.xlu1 %702 }
 0x3ac   : > { %v834_v34 = vpop.permute.xlu1 %833 }
 0x3ae   : > { %v3447_v26 = vpop.eup %3446 }
 0x3af   : > { %v727_v30 = vmul.f32 %v3447_v26, %v4030_v62  ;;  %v934_v26 = vld [vmem:[#allocation8 + $0x40] sm:$0xff] }
 0x3b0   : > { %v712_v28 = vpop.xlane.xlu0 %711  ;;  %v881_v54 = vpop.permute.xlu1 %880 }
 0x3b1   : > { %3452 = vrcp.f32 %v712_v28 }
 0x3b2   : > { %3454 = vrcp.f32 %v703_v27 }
 0x3b3   : > { %v3449_v29 = vpop.eup %3448 }
 0x3b4   : > { %v728_v31 = vmul.f32 %v3449_v29, %v3435_v4  ;;  %v706_v32 = vpop.xlane.xlu0 %705  ;;  %v3451_v36 = vpop.eup %3450 }
 0x3b5   : > { %3456 = vrcp.f32 %v706_v32  ;;  %v731_v38 = vmul.f32 %v3451_v36, %v4034_v3  ;;  %v938_v36 = vld [vmem:[#allocation8 + $0x60] sm:$0xff] }
 0x3b6   : > { %v735_v33 = vpack.c.bf16 %v728_v31, %v727_v30  ;;  %v935_v30 = vld [vmem:[#allocation8 + $0x48] sm:$0xff] }
 0x3b8   : > { %3123 = vmatmul.mubr.msk.bf16.vlgmr.msra.gmra.mxu0 %vm646_vm3, %v735_v33  ;;  %v787_v35 = vpop.permute.xlu0 %786 }
 0x3b9   : > { %3133 = vmatpush3.bf16.msra.mxu0 %v834_v34  ;;  %3134 = vmatprep.mubr.msk.bf16.mxu0 %vm3745_vm1, %v3744_v18 }
 0x3ba   : > { %3127 = vmatpush3.bf16.msra.mxu1 %v787_v35  ;;  %3144 = vmatprep.subr.bf16.mxu0 %v3744_v18 }
 0x3bb   : > { %3138 = vmatprep.subr.bf16.mxu1 %v3744_v18 }
 0x3be   : > { %v3453_v37 = vpop.eup %3452 }
 0x3bf   : > { %v732_v39 = vmul.f32 %v3453_v37, %v3439_v9  ;;  %v3455_v40 = vpop.eup %3454 }
 0x3c0   : > { %v729_v46 = vmul.f32 %v3455_v40, %v4040_v7 }
 0x3c1   : > { %v737_v41 = vpack.c.bf16 %v732_v39, %v731_v38 }
 0x3c2   : > { %v3457_v44 = vpop.eup %3456 }
 0x3c3   : > { %3135 = vmatmul.mubr.msk.bf16.vlgmr.msra.gmra.mxu0 %vm646_vm3, %v737_v41  ;;  %v730_v52 = vmul.f32 %v3457_v44, %v4045_v11 }
 0x3c4   : > { %3146 = vmatprep.mubr.msk.bf16.mxu0 %vm3745_vm1, %v3744_v18 }
 0x3c5   : > { %v736_v53 = vpack.c.bf16 %v730_v52, %v729_v46 }
 0x3c7   : > { %3129 = vmatmul.mubr.msk.bf16.vlgmr.msra.gmra.mxu1 %vm646_vm3, %v736_v53 }
 0x3c8   : > { %3139 = vmatpush3.bf16.msra.mxu1 %v881_v54  ;;  %3140 = vmatprep.mubr.msk.bf16.mxu1 %vm3745_vm1, %v3744_v18 }
 0x3c9   : > { %3150 = vmatprep.subr.bf16.mxu1 %v3744_v18 }
 0x3e1   : > { %v715_v55 = vpop.xlane.xlu1 %714 }
 0x3e2   : > { %3458 = vrcp.f32 %v715_v55  ;;  %v936_v55 = vld [vmem:[#allocation8 + $0x50] sm:$0xff] }
 0x3e5   : > { %v998_v57 = vpop.permute.xlu1 %997 }
 0x3e6   : > { %v1003_v5 = vsel %vm448_vm2, %v998_v57, 0 }
 0x3e9   : > { %v718_v56 = vpop.xlane.xlu0 %717  ;;  %v1050_v61 = vpop.permute.xlu1 %1049 }
 0x3ea   : > { %3460 = vrcp.f32 %v718_v56  ;;  %v1055_v63 = vsel %vm448_vm2, %v1050_v61, 0 }
 0x3ed   : > { %v946_v58 = vpop.permute.xlu0 %945  ;;  %v1102_v7 = vpop.permute.xlu1 %1101 }
 0x3ee   : > { %v951_v59 = vsel %vm448_vm2, %v946_v58, 0  ;;  %v1107_v8 = vsel %vm448_vm2, %v1102_v7, 0 }
 0x3ef   : > { %3145 = vmatpush3.bf16.xpose.msra.mxu0 %v951_v59  ;;  %v3459_v62 = vpop.eup %3458 }
 0x3f0   : > { %3156 = vmatprep.subr.bf16.mxu0 %v3744_v18  ;;  %v733_v2 = vmul.f32 %v3459_v62, %v4056_v19  ;;  %v939_v62 = vld [vmem:[#allocation8 + $0x68] sm:$0xff] }
 0x3f1   : > { %v944_v60 = vpop.permute.xlu0 %943  ;;  %v1100_v9 = vpop.permute.xlu1 %1099 }
 0x3f5   : > { %v996_v1 = vpop.permute.xlu0 %995 }
 0x3f6   : > { %3147 = vmatmul.mubr.msk.bf16.vlgmr.msra.gmra.mxu0 %vm448_vm2, %v944_v60  ;;  %v937_v60 = vld [vmem:[#allocation8 + $0x58] sm:$0xff] }
 0x3f7   : > { %v3461_v0 = vpop.eup %3460  ;;  %3157 = vmatpush3.bf16.xpose.msra.mxu0 %v1055_v63  ;;  %3158 = vmatprep.mubr.msk.bf16.mxu0 %vm3745_vm1, %v3744_v18 }
 0x3f8   : > { %v734_v3 = vmul.f32 %v3461_v0, %v4060_v21  ;;  %3168 = vmatprep.subr.bf16.mxu0 %v3744_v18 }
 0x3f9   : > { %v1048_v6 = vpop.permute.xlu0 %1047 }
 0x3fa   : > { %v738_v4 = vpack.c.bf16 %v734_v3, %v733_v2  ;;  %v940_v2 = vld [vmem:[#allocation8 + $0x70] sm:$0xff] }
 0x3fc   : > { %3141 = vmatmul.mubr.msk.bf16.vlgmr.msra.gmra.mxu1 %vm646_vm3, %v738_v4 }
 0x3fd   : > { %3151 = vmatpush3.bf16.xpose.msra.mxu1 %v1003_v5  ;;  %3152 = vmatprep.mubr.msk.bf16.mxu1 %vm3745_vm1, %v3744_v18 }
 0x3fe   : > { %3159 = vmatmul.mubr.msk.bf16.vlgmr.msra.gmra.mxu0 %vm448_vm2, %v1048_v6  ;;  %3162 = vmatprep.subr.bf16.mxu1 %v3744_v18 }
 0x3ff   : > { %3170 = vmatprep.mubr.msk.bf16.mxu0 %vm3745_vm1, %v3744_v18 }
 0x404   : > { %3153 = vmatmul.mubr.msk.bf16.vlgmr.msra.gmra.mxu1 %vm448_vm2, %v996_v1 }
 0x405   : > { %3163 = vmatpush3.bf16.xpose.msra.mxu1 %v1107_v8  ;;  %3164 = vmatprep.mubr.msk.bf16.mxu1 %vm3745_vm1, %v3744_v18  ;;  %v941_v8 = vld [vmem:[#allocation8 + $0x78] sm:$0xff] }
 0x406   : > { %3174 = vmatprep.subr.bf16.mxu1 %v3744_v18 }
 0x40c   : > { %3165 = vmatmul.mubr.msk.bf16.vlgmr.msra.gmra.mxu1 %vm448_vm2, %v1100_v9 }
 0x40d   : > { %3176 = vmatprep.mubr.msk.bf16.mxu1 %vm3745_vm1, %v3744_v18 }
 0x478   : > { %v4113_v10 = vpop.f32.mrf.mxu0 }
 0x47a   : > { %v3124_v11 = vpop.f32.mrf.mxu0 }
 0x47c   : > { %v4115_v12 = vpop.f32.mrf.mxu0 }
 0x47d   : > { %v927_v13 = vpack.c.bf16 %v4115_v12, %v4113_v10 }
 0x47e   : > { %v3125_v14 = vpop.f32.mrf.mxu0 }
 0x483   : > { %v4119_v15 = vpop.f32.mrf.mxu0 }
 0x485   : > { %v3136_v16 = vpop.f32.mrf.mxu0 }
 0x487   : > { %v4121_v17 = vpop.f32.mrf.mxu1  ;;  %v4123_v19 = vpop.f32.mrf.mxu0 }
 0x488   : > { %v929_v20 = vpack.c.bf16 %v4123_v19, %v4119_v15  ;;  %v1435_v19 = vld [vmem:[#allocation7 + $0x8] sm:$0xff] }
 0x489   : > { %v3130_v21 = vpop.f32.mrf.mxu1  ;;  %v3137_v22 = vpop.f32.mrf.mxu0 }
 0x48b   : > { %v4127_v23 = vpop.f32.mrf.mxu1 }
 0x48c   : > { %v928_v24 = vpack.c.bf16 %v4127_v23, %v4121_v17 }
 0x48d   : > { %v3131_v25 = vpop.f32.mrf.mxu1 }
 0x4b6   : > { %v987_v27 = vpop.f32.mrf.mxu0 }
 0x4b7   : > { %v988_v28 = vadd.f32 %v987_v27, %v934_v26 }
 0x4b8   : > { %v3148_v29 = vpop.f32.mrf.mxu0 }
 0x4b9   : > { %v1150_v31 = vsel %vm646_vm3, %v988_v28, -inf }
 0x4ba   : > { %1151 = vmax.xlane.f32.xlu0 %v1150_v31  ;;  %v990_v32 = vpop.f32.mrf.mxu0 }
 0x4bb   : > { %v991_v33 = vadd.f32 %v990_v32, %v935_v30 }
 0x4bc   : > { %v4132_v34 = vpop.f32.mrf.mxu1  ;;  %v3149_v35 = vpop.f32.mrf.mxu0 }
 0x4bd   : > { %v1153_v37 = vsel %vm646_vm3, %v991_v33, -inf }
 0x4be   : > { %1154 = vmax.xlane.f32.xlu1 %v1153_v37  ;;  %v3142_v38 = vpop.f32.mrf.mxu1  ;;  %v1091_v39 = vpop.f32.mrf.mxu0 }
 0x4bf   : > { %v1092_v40 = vadd.f32 %v1091_v39, %v938_v36 }
 0x4c0   : > { %v4135_v41 = vpop.f32.mrf.mxu1  ;;  %v3160_v44 = vpop.f32.mrf.mxu0 }
 0x4c1   : > { %v930_v46 = vpack.c.bf16 %v4135_v41, %v4132_v34  ;;  %v1162_v52 = vsel %vm646_vm3, %v1092_v40, -inf }
 0x4c2   : > { %1163 = vmax.xlane.f32.xlu1 %v1162_v52  ;;  %v3143_v53 = vpop.f32.mrf.mxu1  ;;  %v1094_v54 = vpop.f32.mrf.mxu0 }
 0x4c3   : > { %v1095_v3 = vadd.f32 %v1094_v54, %v939_v62 }
 0x4c4   : > { %v1039_v56 = vpop.f32.mrf.mxu1  ;;  %v3161_v57 = vpop.f32.mrf.mxu0 }
 0x4c5   : > { %v1040_v58 = vadd.f32 %v1039_v56, %v936_v55  ;;  %v1165_v9 = vsel %vm646_vm3, %v1095_v3, -inf }
 0x4c6   : > { %v3154_v59 = vpop.f32.mrf.mxu1 }
 0x4c7   : > { %v1156_v61 = vsel %vm646_vm3, %v1040_v58, -inf }
 0x4c8   : > { %1157 = vmax.xlane.f32.xlu0 %v1156_v61  ;;  %v1042_v63 = vpop.f32.mrf.mxu1 }
 0x4c9   : > { %v1043_v0 = vadd.f32 %v1042_v63, %v937_v60 }
 0x4ca   : > { %v3155_v1 = vpop.f32.mrf.mxu1 }
 0x4cb   : > { %v1159_v4 = vsel %vm646_vm3, %v1043_v0, -inf }
 0x4cc   : > { %1160 = vmax.xlane.f32.xlu0 %v1159_v4  ;;  %v1143_v5 = vpop.f32.mrf.mxu1 }
 0x4cd   : > { %v1144_v6 = vadd.f32 %v1143_v5, %v940_v2 }
 0x4ce   : > { %v3166_v7 = vpop.f32.mrf.mxu1 }
 0x4cf   : > { %v1168_v11 = vsel %vm646_vm3, %v1144_v6, -inf }
 0x4d0   : > { %1166 = vmax.xlane.f32.xlu0 %v1165_v9  ;;  %1169 = vmax.xlane.f32.xlu1 %v1168_v11  ;;  %v1146_v14 = vpop.f32.mrf.mxu1 }
 0x4d1   : > { %v1147_v16 = vadd.f32 %v1146_v14, %v941_v8 }
 0x4d2   : > { %v3167_v21 = vpop.f32.mrf.mxu1 }
 0x4d3   : > { %v1171_v22 = vsel %vm646_vm3, %v1147_v16, -inf }
 0x4d4   : > { %1172 = vmax.xlane.f32.xlu0 %v1171_v22 }
 0x4e1   : > { %1242 = vrot.lane.b32.xlu1 %v3977_v45, %s3750_s26 }
 0x543   : > { %v1152_v25 = vpop.xlane.xlu0 %1151 }
 0x544   : > { %v1174_v26 = vsub.f32 %v988_v28, %v1152_v25 }
 0x546   : > { %v1182_v27 = vmul.f32 1.442695, %v1174_v26 }
 0x547   : > { %v1155_v29 = vpop.xlane.xlu1 %1154 }
 0x548   : > { %3462 = vpow2.f32 %v1182_v27  ;;  %v1175_v30 = vsub.f32 %v991_v33, %v1155_v29 }
 0x54a   : > { %v1184_v31 = vmul.f32 1.442695, %v1175_v30 }
 0x54b   : > { %v1164_v32 = vpop.xlane.xlu1 %1163 }
 0x54c   : > { %3464 = vpow2.f32 %v1184_v31  ;;  %v1178_v35 = vsub.f32 %v1092_v40, %v1164_v32 }
 0x54e   : > { %v1190_v38 = vmul.f32 1.442695, %v1178_v35 }
 0x551   : > { %v1158_v36 = vpop.xlane.xlu0 %1157 }
 0x552   : > { %v1176_v37 = vsub.f32 %v1040_v58, %v1158_v36 }
 0x554   : > { %v1186_v39 = vmul.f32 1.442695, %v1176_v37 }
 0x555   : > { %v4147_v44 = vpop.eup %3462  ;;  %v1161_v52 = vpop.xlane.xlu0 %1160 }
 0x556   : > { %3466 = vpow2.f32 %v1186_v39  ;;  %v1177_v53 = vsub.f32 %v1043_v0, %v1161_v52  ;;  %v1198_v28 = vsel %vm646_vm3, %v4147_v44, 0.0 }
 0x557   : > { %1199 = vadd.xlane.f32.xlu1 %v1198_v28  ;;  %3468 = vpow2.f32 %v1190_v38  ;;  %v931_v28 = vld [vmem:[#allocation7] sm:$0xff] }
 0x558   : > { %v1188_v54 = vmul.f32 1.442695, %v1177_v53 }
 0x559   : > { %v3465_v33 = vpop.eup %3464  ;;  %v1167_v55 = vpop.xlane.xlu0 %1166 }
 0x55a   : > { %v1170_v56 = vpop.xlane.xlu1 %1169  ;;  %3470 = vpow2.f32 %v1188_v54  ;;  %v1179_v40 = vsub.f32 %v1095_v3, %v1167_v55  ;;  %v1201_v58 = vsel %vm646_vm3, %v3465_v33, 0.0 }
 0x55b   : > { %v1180_v57 = vsub.f32 %v1144_v6, %v1170_v56  ;;  %1202 = vadd.xlane.f32.xlu0 %v1201_v58 }
 0x55c   : > { %v1192_v59 = vmul.f32 1.442695, %v1179_v40 }
 0x55d   : > { %v1194_v60 = vmul.f32 1.442695, %v1180_v57  ;;  %v1173_v62 = vpop.xlane.xlu0 %1172  ;;  %v932_v57 = vpack.c.bf16 %v931_v28, %v931_v28 }
 0x55e   : > { %v1243_v61 = vpop.permute.xlu1 %1242  ;;  %3472 = vpow2.f32 %v1192_v59  ;;  %v1181_v63 = vsub.f32 %v1147_v16, %v1173_v62 }
 0x55f   : > { %3169 = vmatpush3.bf16.msra.mxu0 %v1243_v61  ;;  %3474 = vpow2.f32 %v1194_v60 }
 0x560   : > { %3180 = vmatprep.subr.bf16.mxu0 %v3744_v18  ;;  %v1196_v0 = vmul.f32 1.442695, %v1181_v63 }
 0x562   : > { %3476 = vpow2.f32 %v1196_v0 }
 0x563   : > { %v4153_v1 = vpop.eup %3466 }
 0x564   : > { %v1204_v2 = vsel %vm646_vm3, %v4153_v1, 0.0  ;;  %v4157_v3 = vpop.eup %3468 }
 0x565   : > { %1205 = vadd.xlane.f32.xlu1 %v1204_v2  ;;  %v1210_v5 = vsel %vm646_vm3, %v4157_v3, 0.0 }
 0x567   : > { %v3471_v4 = vpop.eup %3470 }
 0x568   : > { %v1207_v6 = vsel %vm646_vm3, %v3471_v4, 0.0 }
 0x569   : > { %1211 = vadd.xlane.f32.xlu1 %v1210_v5  ;;  %1208 = vadd.xlane.f32.xlu0 %v1207_v6 }
 0x56b   : > { %v3473_v7 = vpop.eup %3472 }
 0x56c   : > { %v4162_v8 = vpop.eup %3474  ;;  %v1213_v9 = vsel %vm646_vm3, %v3473_v7, 0.0 }
 0x56d   : > { %v1216_v11 = vsel %vm646_vm3, %v4162_v8, 0.0  ;;  %1214 = vadd.xlane.f32.xlu0 %v1213_v9 }
 0x56e   : > { %1217 = vadd.xlane.f32.xlu1 %v1216_v11 }
 0x56f   : > { %v4167_v14 = vpop.eup %3476 }
 0x570   : > { %v1219_v16 = vsel %vm646_vm3, %v4167_v14, 0.0 }
 0x571   : > { %1220 = vadd.xlane.f32.xlu0 %v1219_v16 }
 0x57f   : > { %1336 = vrot.lane.b32.xlu1 %v3979_v47, %s3750_s26 }
 0x583   : > { %1383 = vrot.lane.b32.xlu1 %v3989_v51, %s3750_s26 }
 0x587   : > { %1660 = vrot.lane.b32.xlu1 %v3987_v50, %s3751_s16  ;;  %1289 = vrot.lane.b32.xlu0 %v3987_v50, %s3750_s26  ;;  %s4486_s26 = scalar_lea.hbm %s4539_s6, %s2993_s15 }
 0x58b   : > { %1711 = vrot.lane.b32.xlu1 %v3979_v47, %s3751_s16  ;;  %1609 = vrot.lane.b32.xlu0 %v3977_v45, %s3751_s16 }
 0x58f   : > { %1762 = vrot.lane.b32.xlu1 %v3989_v51, %s3751_s16  ;;  %1607 = vrot.lane.b32.xlu0 %v3981_v48, %s3752_s17  ;;  %s3664_s16 = scalar_lea.vmem %s4488_s30, 1024 }
 0x590   : > { %p3665_p7 = scmp.ne.s32.totalorder %s4488_s30, %s3664_s16 }
 0x592   : > { %p3666_p12 = pnand %p3665_p7, %p4560_p1 }
 0x593   : > { %1760 = vrot.lane.b32.xlu1 %v3975_v43, %s3752_s17  ;;  %1658 = vrot.lane.b32.xlu0 %v3973_v42, %s3752_s17 }
 0x594   : > { %p3667_p9 = pneg %p3666_p12 }
 0x597   : > { %1709 = vrot.lane.b32.xlu0 %v3983_v49, %s3752_s17  ;;  %s3757_s17 = smov [#allocation10]  }
 0x5e0   : > { %v1200_v21 = vpop.xlane.xlu1 %1199 }
 0x5e1   : > { %3478 = vrcp.f32 %v1200_v21 }
 0x5e4   : > { %v1203_v22 = vpop.xlane.xlu0 %1202 }
 0x5e5   : > { %3480 = vrcp.f32 %v1203_v22 }
 0x5ee   : > { %v1206_v25 = vpop.xlane.xlu1 %1205  ;;  %v3479_v26 = vpop.eup %3478 }
 0x5ef   : > { %3482 = vrcp.f32 %v1206_v25  ;;  %v1230_v31 = vmul.f32 %v3479_v26, %v4147_v44 }
 0x5f2   : > { %v3481_v27 = vpop.eup %3480  ;;  %v1212_v29 = vpop.xlane.xlu1 %1211 }
 0x5f3   : > { %v1209_v30 = vpop.xlane.xlu0 %1208  ;;  %v1231_v32 = vmul.f32 %v3481_v27, %v3465_v33 }
 0x5f4   : > { %3484 = vrcp.f32 %v1209_v30 }
 0x5f5   : > { %3486 = vrcp.f32 %v1212_v29  ;;  %v1238_v35 = vpack.c.bf16 %v1231_v32, %v1230_v31 }
 0x5f7   : > { %v1215_v36 = vpop.xlane.xlu0 %1214  ;;  %v1218_v37 = vpop.xlane.xlu1 %1217  ;;  %3171 = vmatmul.mubr.msk.bf16.vlgmr.msra.gmra.mxu0 %vm646_vm3, %v1238_v35 }
 0x5f8   : > { %3488 = vrcp.f32 %v1215_v36  ;;  %3182 = vmatprep.mubr.msk.bf16.mxu0 %vm3745_vm1, %v3744_v18 }
 0x5f9   : > { %3490 = vrcp.f32 %v1218_v37 }
 0x5fb   : > { %v1221_v38 = vpop.xlane.xlu0 %1220  ;;  %v1337_v39 = vpop.permute.xlu1 %1336 }
 0x5fc   : > { %3492 = vrcp.f32 %v1221_v38  ;;  %3181 = vmatpush3.bf16.msra.mxu0 %v1337_v39  ;;  %v3483_v53 = vpop.eup %3482 }
 0x5fd   : > { %v1232_v33 = vmul.f32 %v3483_v53, %v4153_v1 }
 0x5ff   : > { %v1290_v52 = vpop.permute.xlu0 %1289  ;;  %v1384_v61 = vpop.permute.xlu1 %1383 }
 0x600   : > { %3175 = vmatpush3.bf16.msra.mxu1 %v1290_v52 }
 0x601   : > { %3186 = vmatprep.subr.bf16.mxu1 %v3744_v18  ;;  %v3485_v44 = vpop.eup %3484 }
 0x602   : > { %v3487_v54 = vpop.eup %3486  ;;  %v1233_v55 = vmul.f32 %v3485_v44, %v3471_v4 }
 0x603   : > { %v1234_v58 = vmul.f32 %v3487_v54, %v4157_v3  ;;  %v1531_v3 = vsel %vm1449_vm4, %v932_v57, 0  ;;  %v1661_v4 = vpop.permute.xlu1 %1660  ;;  %v1610_v10 = vpop.permute.xlu0 %1609 }
 0x604   : > { %v1239_v40 = vpack.c.bf16 %v1233_v55, %v1232_v33  ;;  %v1666_v5 = vsel %vm448_vm2, %v1661_v4, 0  ;;  %v1615_v26 = vsel %vm448_vm2, %v1610_v10, 0 }
 0x605   : > { %v3489_v56 = vpop.eup %3488 }
 0x606   : > { %v1235_v59 = vmul.f32 %v3489_v56, %v3473_v7  ;;  %v3491_v60 = vpop.eup %3490  ;;  %3177 = vmatmul.mubr.msk.bf16.vlgmr.msra.gmra.mxu1 %vm646_vm3, %v1239_v40 }
 0x607   : > { %3187 = vmatpush3.bf16.msra.mxu1 %v1384_v61  ;;  %3188 = vmatprep.mubr.msk.bf16.mxu1 %vm3745_vm1, %v3744_v18  ;;  %v1236_v0 = vmul.f32 %v3491_v60, %v4162_v8  ;;  %v1712_v12 = vpop.permute.xlu1 %1711 }
 0x608   : > { %v1240_v62 = vpack.c.bf16 %v1235_v59, %v1234_v58  ;;  %3333 = vmatprep.subr.msk.bf16.mxu1 %vm1449_vm4, %v932_v57  ;;  %v1717_v44 = vsel %vm448_vm2, %v1712_v12, 0 }
 0x609   : > { %v3493_v63 = vpop.eup %3492 }
 0x60a   : > { %3183 = vmatmul.mubr.msk.bf16.vlgmr.msra.gmra.mxu0 %vm646_vm3, %v1240_v62  ;;  %v1237_v1 = vmul.f32 %v3493_v63, %v4167_v14 }
 0x60b   : > { %v1763_v17 = vpop.permute.xlu1 %1762 }
 0x60c   : > { %v1241_v2 = vpack.c.bf16 %v1237_v1, %v1236_v0 }
 0x60e   : > { %3189 = vmatmul.mubr.msk.bf16.vlgmr.msra.gmra.mxu1 %vm646_vm3, %v1241_v2 }
 0x60f   : > { %3204 = vmatprep.mubr.msk.bf16.mxu1 %vm448_vm2, %v927_v13  ;;  %3203 = vmatpush3.bf16.msra.mxu1 %v1531_v3  ;;  %v1608_v13 = vpop.permute.xlu0 %1607  ;;  %v1761_v15 = vpop.permute.xlu1 %1760 }
 0x610   : > { %3218 = vmatprep.subr.bf16.mxu1 %v3744_v18 }
 0x613   : > { %v1659_v23 = vpop.permute.xlu0 %1658 }
 0x616   : > { %3205 = vmatmul.mubr.msk.bf16.vlgmr.msra.gmra.mxu1 %vm448_vm2, %v928_v24  ;;  %v1768_v24 = vsel %vm448_vm2, %v1763_v17, 0  ;;  %v1601_v17 = vld [vmem:[#allocation8 + $0x90] sm:$0xff] }
 0x617   : > { %3219 = vmatpush3.bf16.xpose.msra.mxu1 %v1666_v5  ;;  %3208 = vmatprep.mubr.msk.bf16.mxu1 %vm448_vm2, %v929_v20  ;;  %v1436_v20 = vpack.c.bf16 %v1435_v19, %v1435_v19  ;;  %v1710_v55 = vpop.permute.xlu0 %1709  ;;  %v1600_v19 = vld [vmem:[#allocation8 + $0x88] sm:$0xff] }
 0x618   : > { %3230 = vmatprep.subr.bf16.mxu1 %v3744_v18 }
 0x619   : > { %3332 = vmatprep.subr.msk.bf16.mxu0 %vm1449_vm4, %v1436_v20  ;;  %v1451_v34 = vsel %vm1449_vm4, %v1436_v20, 0 }
 0x61a   : > { %3193 = vmatpush3.bf16.msra.mxu0 %v1451_v34 }
 0x61b   : > { %3212 = vmatprep.subr.bf16.mxu0 %v3744_v18 }
 0x61e   : > { %3209 = vmatmul.mubr.msk.bf16.gmra.mxu1 %vm448_vm2, %v930_v46 }
 0x61f   : > { %3220 = vmatprep.mubr.msk.bf16.mxu1 %vm3745_vm1, %v3744_v18 }
 0x626   : > { %3221 = vmatmul.mubr.msk.bf16.vlgmr.msra.gmra.mxu1 %vm448_vm2, %v1659_v23 }
 0x627   : > { %3231 = vmatpush3.bf16.xpose.msra.mxu1 %v1768_v24  ;;  %3232 = vmatprep.mubr.msk.bf16.mxu1 %vm3745_vm1, %v3744_v18 }
 0x628   : > { %3242 = vmatprep.subr.bf16.mxu1 %v3744_v18 }
 0x62e   : > { %3233 = vmatmul.mubr.msk.bf16.vlgmr.msra.gmra.mxu1 %vm448_vm2, %v1761_v15 }
 0x62f   : > { %3244 = vmatprep.mubr.msk.bf16.mxu1 %vm3745_vm1, %v3744_v18 }
 0x6b7   : > { %v1282_v41 = vpop.f32.mrf.mxu0 }
 0x6b9   : > { %v3172_v46 = vpop.f32.mrf.mxu0 }
 0x6bb   : > { %v1285_v6 = vpop.f32.mrf.mxu0 }
 0x6bc   : > { %v1430_v7 = vpack.c.bf16 %v1285_v6, %v1282_v41  ;;  %v1602_v41 = vld [vmem:[#allocation8 + $0x98] sm:$0xff] }
 0x6bd   : > { %v3173_v8 = vpop.f32.mrf.mxu0 }
 0x6be   : > { %3194 = vmatprep.mubr.msk.bf16.mxu0 %vm448_vm2, %v1430_v7  ;;  %v1603_v8 = vld [vmem:[#allocation8 + $0xa0] sm:$0xff] }
 0x6c6   : > { %v1329_v9 = vpop.f32.mrf.mxu1 }
 0x6c8   : > { %v3178_v11 = vpop.f32.mrf.mxu1 }
 0x6ca   : > { %v1376_v14 = vpop.f32.mrf.mxu0  ;;  %v1332_v16 = vpop.f32.mrf.mxu1 }
 0x6cb   : > { %v1431_v21 = vpack.c.bf16 %v1332_v16, %v1329_v9  ;;  %v1605_v16 = vld [vmem:[#allocation8 + $0xb0] sm:$0xff] }
 0x6cc   : > { %v3184_v22 = vpop.f32.mrf.mxu0  ;;  %v3179_v25 = vpop.f32.mrf.mxu1 }
 0x6cd   : > { %3195 = vmatmul.mubr.msk.bf16.vlgmr.msra.gmra.mxu0 %vm448_vm2, %v1431_v21 }
 0x6ce   : > { %v1379_v27 = vpop.f32.mrf.mxu0  ;;  %3213 = vmatpush3.bf16.xpose.msra.mxu0 %v1615_v26  ;;  %v1423_v30 = vpop.f32.mrf.mxu1  ;;  %v1604_v26 = vld [vmem:[#allocation8 + $0xa8] sm:$0xff] }
 0x6cf   : > { %v1432_v29 = vpack.c.bf16 %v1379_v27, %v1376_v14  ;;  %3224 = vmatprep.subr.bf16.mxu0 %v3744_v18 }
 0x6d0   : > { %v3185_v31 = vpop.f32.mrf.mxu0  ;;  %v3190_v32 = vpop.f32.mrf.mxu1 }
 0x6d1   : > { %3198 = vmatprep.mubr.msk.bf16.mxu0 %vm448_vm2, %v1432_v29  ;;  %v1606_v31 = vld [vmem:[#allocation8 + $0xb8] sm:$0xff] }
 0x6d2   : > { %v1426_v35 = vpop.f32.mrf.mxu1 }
 0x6d3   : > { %v1433_v36 = vpack.c.bf16 %v1426_v35, %v1423_v30 }
 0x6d4   : > { %v3191_v37 = vpop.f32.mrf.mxu1 }
 0x6d5   : > { %3199 = vmatmul.mubr.msk.bf16.gmra.mxu0 %vm448_vm2, %v1433_v36 }
 0x6d6   : > { %v4239_v38 = vpop.f32.mrf.mxu1  ;;  %3214 = vmatprep.mubr.msk.bf16.mxu0 %vm3745_vm1, %v3744_v18 }
 0x6d8   : > { %v4243_v39 = vpop.f32.mrf.mxu1 }
 0x6da   : > { %v4245_v52 = vpop.f32.mrf.mxu1 }
 0x6dc   : > { %v4247_v53 = vpop.f32.mrf.mxu1 }
 0x6dd   : > { %3215 = vmatmul.mubr.msk.bf16.vlgmr.msra.gmra.mxu0 %vm448_vm2, %v1608_v13  ;;  %v1599_v13 = vld [vmem:[#allocation8 + $0x80] sm:$0xff] }
 0x6de   : > { %3225 = vmatpush3.bf16.xpose.msra.mxu0 %v1717_v44  ;;  %v4251_v28 = vpop.f32.mrf.mxu1  ;;  %3226 = vmatprep.mubr.msk.bf16.mxu0 %vm3745_vm1, %v3744_v18 }
 0x6df   : > { %3236 = vmatprep.subr.bf16.mxu0 %v3744_v18 }
 0x6e0   : > { %v4256_v54 = vpop.f32.mrf.mxu1 }
 0x6e2   : > { %v4258_v33 = vpop.f32.mrf.mxu1 }
 0x6e4   : > { %v4260_v56 = vpop.f32.mrf.mxu1 }
 0x6e5   : > { %3227 = vmatmul.mubr.msk.bf16.vlgmr.msra.gmra.mxu0 %vm448_vm2, %v1710_v55 }
 0x6e6   : > { %v1702_v40 = vpop.f32.mrf.mxu1  ;;  %3238 = vmatprep.mubr.msk.bf16.mxu0 %vm3745_vm1, %v3744_v18 }
 0x6e7   : > { %v1703_v20 = vadd.f32 %v1702_v40, %v1601_v17 }
 0x6e8   : > { %v3222_v57 = vpop.f32.mrf.mxu1 }
 0x6e9   : > { %v1817_v14 = vsel %vm646_vm3, %v1703_v20, -inf }
 0x6ea   : > { %v1705_v58 = vpop.f32.mrf.mxu1 }
 0x6eb   : > { %v1706_v9 = vadd.f32 %v1705_v58, %v1602_v41 }
 0x6ec   : > { %v3223_v59 = vpop.f32.mrf.mxu1 }
 0x6ed   : > { %v1820_v30 = vsel %vm646_vm3, %v1706_v9, -inf }
 0x6ee   : > { %v1804_v60 = vpop.f32.mrf.mxu1 }
 0x6ef   : > { %v1805_v27 = vadd.f32 %v1804_v60, %v1605_v16 }
 0x6f0   : > { %v3234_v61 = vpop.f32.mrf.mxu1 }
 0x6f1   : > { %v1829_v55 = vsel %vm646_vm3, %v1805_v27, -inf }
 0x6f2   : > { %v1807_v62 = vpop.f32.mrf.mxu1 }
 0x6f3   : > { %v1808_v37 = vadd.f32 %v1807_v62, %v1606_v31 }
 0x6f4   : > { %v3235_v63 = vpop.f32.mrf.mxu1 }
 0x6f5   : > { %v1832_v40 = vsel %vm646_vm3, %v1808_v37, -inf }
 0x78d   : > { %v4265_v0 = vpop.f32.mrf.mxu0 }
 0x78f   : > { %v4267_v1 = vpop.f32.mrf.mxu0 }
 0x791   : > { %v4269_v2 = vpop.f32.mrf.mxu0 }
 0x793   : > { %v4271_v3 = vpop.f32.mrf.mxu0 }
 0x795   : > { %v4273_v4 = vpop.f32.mrf.mxu0 }
 0x797   : > { %v4275_v5 = vpop.f32.mrf.mxu0 }
 0x799   : > { %v4277_v10 = vpop.f32.mrf.mxu0 }
 0x79b   : > { %v4279_v12 = vpop.f32.mrf.mxu0 }
 0x79d   : > { %v1651_v23 = vpop.f32.mrf.mxu0 }
 0x79e   : > { %v4281_v24 = vadd.f32 %v1651_v23, %v1599_v13 }
 0x79f   : > { %v3216_v15 = vpop.f32.mrf.mxu0 }
 0x7a0   : > { %v1811_v34 = vsel %vm646_vm3, %v4281_v24, -inf }
 0x7a1   : > { %1812 = vmax.xlane.f32.xlu0 %v1811_v34  ;;  %v1654_v46 = vpop.f32.mrf.mxu0 }
 0x7a2   : > { %v1655_v6 = vadd.f32 %v1654_v46, %v1600_v19 }
 0x7a3   : > { %v3217_v7 = vpop.f32.mrf.mxu0 }
 0x7a4   : > { %v1814_v11 = vsel %vm646_vm3, %v1655_v6, -inf }
 0x7a5   : > { %1815 = vmax.xlane.f32.xlu1 %v1814_v11  ;;  %v1753_v21 = vpop.f32.mrf.mxu0  ;;  %1818 = vmax.xlane.f32.xlu0 %v1817_v14 }
 0x7a6   : > { %v4287_v22 = vadd.f32 %v1753_v21, %v1603_v8 }
 0x7a7   : > { %v3228_v25 = vpop.f32.mrf.mxu0 }
 0x7a8   : > { %v1823_v29 = vsel %vm646_vm3, %v4287_v22, -inf }
 0x7a9   : > { %1824 = vmax.xlane.f32.xlu1 %v1823_v29  ;;  %v1756_v32 = vpop.f32.mrf.mxu0  ;;  %1821 = vmax.xlane.f32.xlu0 %v1820_v30 }
 0x7aa   : > { %v1757_v35 = vadd.f32 %v1756_v32, %v1604_v26 }
 0x7ab   : > { %v3229_v36 = vpop.f32.mrf.mxu0 }
 0x7ac   : > { %v1826_v44 = vsel %vm646_vm3, %v1757_v35, -inf }
 0x7ad   : > { %1827 = vmax.xlane.f32.xlu0 %v1826_v44  ;;  %1830 = vmax.xlane.f32.xlu1 %v1829_v55 }
 0x7b1   : > { %1833 = vmax.xlane.f32.xlu0 %v1832_v40 }
 0x82a   : > { %v1813_v57 = vpop.xlane.xlu0 %1812 }
 0x82b   : > { %v1835_v36 = vsub.f32 %v4281_v24, %v1813_v57 }
 0x82e   : > { %v1816_v58 = vpop.xlane.xlu1 %1815  ;;  %v1819_v59 = vpop.xlane.xlu0 %1818 }
 0x82f   : > { %v1837_v60 = vsub.f32 %v1703_v20, %v1819_v59  ;;  %v1836_v34 = vsub.f32 %v1655_v6, %v1816_v58 }
 0x831   : > { %v1847_v61 = vmul.f32 1.442695, %v1837_v60  ;;  %v1845_v8 = vmul.f32 1.442695, %v1836_v34 }
 0x832   : > { %v1825_v63 = vpop.xlane.xlu1 %1824  ;;  %v1822_v13 = vpop.xlane.xlu0 %1821 }
 0x833   : > { %v1838_v17 = vsub.f32 %v1706_v9, %v1822_v13  ;;  %3494 = vpow2.f32 %v1847_v61  ;;  %v1839_v44 = vsub.f32 %v4287_v22, %v1825_v63 }
 0x835   : > { %v1849_v23 = vmul.f32 1.442695, %v1838_v17  ;;  %v1851_v55 = vmul.f32 1.442695, %v1839_v44 }
 0x836   : > { %v1828_v62 = vpop.xlane.xlu0 %1827  ;;  %v1831_v15 = vpop.xlane.xlu1 %1830 }
 0x837   : > { %v1841_v19 = vsub.f32 %v1805_v27, %v1831_v15  ;;  %3496 = vpow2.f32 %v1849_v23  ;;  %v1840_v11 = vsub.f32 %v1757_v35, %v1828_v62 }
 0x839   : > { %v1855_v41 = vmul.f32 1.442695, %v1841_v19  ;;  %v1853_v16 = vmul.f32 1.442695, %v1840_v11 }
 0x83a   : > { %v1834_v46 = vpop.xlane.xlu0 %1833 }
 0x83b   : > { %v1842_v7 = vsub.f32 %v1808_v37, %v1834_v46  ;;  %3498 = vpow2.f32 %v1855_v41  ;;  %v1843_v37 = vmul.f32 1.442695, %v1835_v36 }
 0x83d   : > { %v1857_v14 = vmul.f32 1.442695, %v1842_v7 }
 0x83f   : > { %3500 = vpow2.f32 %v1857_v14 }
 0x840   : > { %v4295_v20 = vpop.eup %3494  ;;  %3502 = vpow2.f32 %v1845_v8 }
 0x841   : > { %v1865_v9 = vsel %vm646_vm3, %v4295_v20, 0.0  ;;  %3504 = vpow2.f32 %v1853_v16 }
 0x842   : > { %1866 = vadd.xlane.f32.xlu1 %v1865_v9  ;;  %3506 = vpow2.f32 %v1843_v37 }
 0x843   : > { %3508 = vpow2.f32 %v1851_v55 }
 0x844   : > { %v3497_v21 = vpop.eup %3496 }
 0x845   : > { %v1868_v6 = vsel %vm646_vm3, %v3497_v21, 0.0 }
 0x846   : > { %1869 = vadd.xlane.f32.xlu0 %v1868_v6 }
 0x848   : > { %v4300_v25 = vpop.eup %3498 }
 0x849   : > { %v1877_v26 = vsel %vm646_vm3, %v4300_v25, 0.0 }
 0x84a   : > { %1878 = vadd.xlane.f32.xlu1 %v1877_v26 }
 0x84c   : > { %v4304_v27 = vpop.eup %3500 }
 0x84d   : > { %v1880_v29 = vsel %vm646_vm3, %v4304_v27, 0.0  ;;  %v4308_v30 = vpop.eup %3502 }
 0x84e   : > { %1881 = vadd.xlane.f32.xlu0 %v1880_v29  ;;  %v1862_v31 = vsel %vm646_vm3, %v4308_v30, 0.0  ;;  %v4312_v32 = vpop.eup %3504 }
 0x84f   : > { %v1874_v35 = vsel %vm646_vm3, %v4312_v32, 0.0  ;;  %v3507_v40 = vpop.eup %3506 }
 0x850   : > { %v1859_v24 = vsel %vm646_vm3, %v3507_v40, 0.0  ;;  %v4325_v57 = vpop.eup %3508 }
 0x851   : > { %v1871_v22 = vsel %vm646_vm3, %v4325_v57, 0.0 }
 0x852   : > { %1863 = vadd.xlane.f32.xlu0 %v1862_v31 }
 0x856   : > { %1875 = vadd.xlane.f32.xlu0 %v1874_v35 }
 0x85b   : > { %1903 = vrot.lane.b32.xlu1 %v3977_v45, %s3753_s10 }
 0x86c   : > { %1950 = vrot.lane.b32.xlu0 %v3987_v50, %s3753_s10 }
 0x870   : > { %2197 = vrot.lane.b32.xlu0 %v3977_v45, %s3754_s18 }
 0x874   : > { %2248 = vrot.lane.b32.xlu0 %v3987_v50, %s3754_s18 }
 0x878   : > { %2246 = vrot.lane.b32.xlu0 %v3973_v42, %s3755_s12 }
 0x87c   : > { %2297 = vrot.lane.b32.xlu0 %v3983_v49, %s3755_s12 }
 0x87f   : > { %1860 = vadd.xlane.f32.xlu1 %v1859_v24 }
 0x883   : > { %1872 = vadd.xlane.f32.xlu1 %v1871_v22  ;;  %v2096_v22 = vld [vmem:[#allocation7 + $0x10] sm:$0xff] }
 0x894   : > { %1997 = vrot.lane.b32.xlu1 %v3979_v47, %s3753_s10 }
 0x898   : > { %2044 = vrot.lane.b32.xlu1 %v3989_v51, %s3753_s10  ;;  %s3668_s10 = sshll.u32 %s3757_s17, 4  ;;  %s3669_s10 = int_to_ptr.vmem [resolvable:$false] %s3668_s10 }
 0x899   : > { %p3671_p13 = scmp.lt.s32.totalorder %s4488_s30, %s3669_s10 }
 0x89c   : > { %2195 = vrot.lane.b32.xlu1 %v3981_v48, %s3755_s12 }
 0x8a0   : > { %2299 = vrot.lane.b32.xlu1 %v3979_v47, %s3754_s18 }
 0x8a4   : > { %2350 = vrot.lane.b32.xlu1 %v3989_v51, %s3754_s18  ;;  %s3670_s18 = scalar_lea.vmem %s3669_s10, 2048 }
 0x8a5   : > { %p3672_p0 = scmp.lt.s32.totalorder %s3670_s18, %s3664_s16 }
 0x8a7   : > { %p3673_p2 = por %p3672_p0, %p3671_p13 }
 0x8a8   : > { %2348 = vrot.lane.b32.xlu1 %v3975_v43, %s3755_s12 }
 0x8a9   : > { %p3674_p10 = pnand %p3673_p2, %p3667_p9 }
 0x8cb   : > { %v1867_v42 = vpop.xlane.xlu1 %1866 }
 0x8cf   : > { %v1870_v49 = vpop.xlane.xlu0 %1869 }
 0x8d0   : > { %3510 = vrcp.f32 %v1870_v49 }
 0x8d1   : > { %3512 = vrcp.f32 %v1867_v42  ;;  %v2097_v42 = vpack.c.bf16 %v2096_v22, %v2096_v22 }
 0x8d3   : > { %v1879_v58 = vpop.xlane.xlu1 %1878  ;;  %v2111_v49 = vsel %vm1449_vm4, %v2097_v42, 0 }
 0x8d7   : > { %v1882_v59 = vpop.xlane.xlu0 %1881  ;;  %v1904_v60 = vpop.permute.xlu1 %1903 }
 0x8d8   : > { %3237 = vmatpush3.bf16.msra.mxu0 %v1904_v60  ;;  %3514 = vrcp.f32 %v1882_v59 }
 0x8d9   : > { %3248 = vmatprep.subr.bf16.mxu0 %v3744_v18  ;;  %3516 = vrcp.f32 %v1879_v58 }
 0x8db   : > { %v1864_v61 = vpop.xlane.xlu0 %1863 }
 0x8dc   : > { %3518 = vrcp.f32 %v1864_v61 }
 0x8dd   : > { %v3511_v63 = vpop.eup %3510 }
 0x8de   : > { %v3513_v48 = vpop.eup %3512  ;;  %v1894_v17 = vmul.f32 %v3511_v63, %v3497_v21 }
 0x8df   : > { %v1876_v13 = vpop.xlane.xlu0 %1875  ;;  %v1893_v62 = vmul.f32 %v3513_v48, %v4295_v20 }
 0x8e1   : > { %v1900_v43 = vpack.c.bf16 %v1894_v17, %v1893_v62 }
 0x8e3   : > { %v1951_v23 = vpop.permute.xlu0 %1950 }
 0x8e4   : > { %3243 = vmatpush3.bf16.msra.mxu1 %v1951_v23 }
 0x8e5   : > { %3254 = vmatprep.subr.bf16.mxu1 %v3744_v18  ;;  %v3515_v34 = vpop.eup %3514 }
 0x8e6   : > { %v3517_v46 = vpop.eup %3516  ;;  %v1898_v7 = vmul.f32 %v3515_v34, %v4304_v27 }
 0x8e7   : > { %3245 = vmatmul.mubr.msk.bf16.vlgmr.msra.gmra.mxu1 %vm646_vm3, %v1900_v43  ;;  %v1897_v14 = vmul.f32 %v3517_v46, %v4300_v25  ;;  %v2198_v20 = vpop.permute.xlu0 %2197  ;;  %v2187_v43 = vld [vmem:[#allocation8 + $0xc0] sm:$0xff] }
 0x8e8   : > { %3256 = vmatprep.mubr.msk.bf16.mxu1 %vm3745_vm1, %v3744_v18  ;;  %v2203_v26 = vsel %vm448_vm2, %v2198_v20, 0 }
 0x8e9   : > { %v3519_v8 = vpop.eup %3518  ;;  %v1902_v9 = vpack.c.bf16 %v1898_v7, %v1897_v14 }
 0x8ea   : > { %v1892_v6 = vmul.f32 %v3519_v8, %v4308_v30 }
 0x8eb   : > { %v2249_v30 = vpop.permute.xlu0 %2248 }
 0x8ec   : > { %v2254_v44 = vsel %vm448_vm2, %v2249_v30, 0 }
 0x8ef   : > { %v2247_v24 = vpop.permute.xlu0 %2246 }
 0x908   : > { %v1861_v15 = vpop.xlane.xlu1 %1860 }
 0x909   : > { %3520 = vrcp.f32 %v1861_v15 }
 0x90c   : > { %v1873_v19 = vpop.xlane.xlu1 %1872 }
 0x90d   : > { %3522 = vrcp.f32 %v1873_v19 }
 0x90e   : > { %3524 = vrcp.f32 %v1876_v13 }
 0x910   : > { %v1998_v41 = vpop.permute.xlu1 %1997 }
 0x914   : > { %v2045_v11 = vpop.permute.xlu1 %2044 }
 0x915   : > { %3255 = vmatpush3.bf16.msra.mxu1 %v2045_v11  ;;  %v2188_v11 = vld [vmem:[#allocation8 + $0xc8] sm:$0xff] }
 0x916   : > { %v3521_v16 = vpop.eup %3520  ;;  %3270 = vmatprep.subr.bf16.mxu1 %v3744_v18 }
 0x917   : > { %v1891_v21 = vmul.f32 %v3521_v16, %v3507_v40 }
 0x918   : > { %3257 = vmatmul.mubr.msk.bf16.vlgmr.msra.gmra.mxu1 %vm646_vm3, %v1902_v9  ;;  %v2196_v29 = vpop.permute.xlu1 %2195 }
 0x919   : > { %3271 = vmatpush3.bf16.xpose.msra.mxu1 %v2203_v26  ;;  %v1899_v27 = vpack.c.bf16 %v1892_v6, %v1891_v21  ;;  %3272 = vmatprep.mubr.msk.bf16.mxu1 %vm3745_vm1, %v3744_v18 }
 0x91a   : > { %v3523_v25 = vpop.eup %3522  ;;  %3276 = vmatprep.subr.bf16.mxu1 %v3744_v18 }
 0x91b   : > { %3239 = vmatmul.mubr.msk.bf16.vlgmr.msra.gmra.mxu0 %vm646_vm3, %v1899_v27  ;;  %v3525_v31 = vpop.eup %3524  ;;  %v1895_v35 = vmul.f32 %v3523_v25, %v4325_v57 }
 0x91c   : > { %3249 = vmatpush3.bf16.msra.mxu0 %v1998_v41  ;;  %3250 = vmatprep.mubr.msk.bf16.mxu0 %vm3745_vm1, %v3744_v18  ;;  %v2300_v36 = vpop.permute.xlu1 %2299  ;;  %v1896_v37 = vmul.f32 %v3525_v31, %v4312_v32 }
 0x91d   : > { %3334 = vmatprep.subr.msk.bf16.mxu0 %vm1449_vm4, %v2097_v42  ;;  %v2305_v14 = vsel %vm448_vm2, %v2300_v36, 0 }
 0x91e   : > { %v1901_v55 = vpack.c.bf16 %v1896_v37, %v1895_v35 }
 0x920   : > { %3273 = vmatmul.mubr.msk.bf16.vlgmr.msra.gmra.mxu1 %vm448_vm2, %v2196_v29  ;;  %v2351_v40 = vpop.permute.xlu1 %2350  ;;  %v2189_v29 = vld [vmem:[#allocation8 + $0xd0] sm:$0xff] }
 0x921   : > { %3277 = vmatpush3.bf16.xpose.msra.mxu1 %v2254_v44  ;;  %3278 = vmatprep.mubr.msk.bf16.mxu1 %vm3745_vm1, %v3744_v18  ;;  %v2356_v57 = vsel %vm448_vm2, %v2351_v40, 0 }
 0x922   : > { %3288 = vmatprep.subr.bf16.mxu1 %v3744_v18 }
 0x923   : > { %3251 = vmatmul.mubr.msk.bf16.vlgmr.msra.gmra.mxu0 %vm646_vm3, %v1901_v55  ;;  %v2190_v55 = vld [vmem:[#allocation8 + $0xd8] sm:$0xff] }
 0x924   : > { %v2349_v32 = vpop.permute.xlu1 %2348  ;;  %3261 = vmatpush3.bf16.msra.mxu0 %v2111_v49  ;;  %v2298_v49 = vpop.permute.xlu0 %2297 }
 0x925   : > { %3282 = vmatprep.subr.bf16.mxu0 %v3744_v18 }
 0x928   : > { %3279 = vmatmul.mubr.msk.bf16.vlgmr.msra.gmra.mxu1 %vm448_vm2, %v2247_v24 }
 0x929   : > { %3289 = vmatpush3.bf16.xpose.msra.mxu1 %v2356_v57  ;;  %3290 = vmatprep.mubr.msk.bf16.mxu1 %vm3745_vm1, %v3744_v18 }
 0x92a   : > { %3300 = vmatprep.subr.bf16.mxu1 %v3744_v18 }
 0x930   : > { %3291 = vmatmul.mubr.msk.bf16.vlgmr.msra.gmra.mxu1 %vm448_vm2, %v2349_v32 }
 0x931   : > { %3302 = vmatprep.mubr.msk.bf16.mxu1 %vm3745_vm1, %v3744_v18 }
 0x9a7   : > { %v1990_v58 = vpop.f32.mrf.mxu1 }
 0x9a9   : > { %v3246_v59 = vpop.f32.mrf.mxu1 }
 0x9ab   : > { %v1993_v60 = vpop.f32.mrf.mxu1 }
 0x9ac   : > { %v2092_v41 = vpack.c.bf16 %v1993_v60, %v1990_v58 }
 0x9ad   : > { %v3247_v61 = vpop.f32.mrf.mxu1 }
 0x9d8   : > { %v2084_v63 = vpop.f32.mrf.mxu1 }
 0x9da   : > { %v3258_v13 = vpop.f32.mrf.mxu1 }
 0x9db   : > { %v1943_v48 = vpop.f32.mrf.mxu0 }
 0x9dc   : > { %v2087_v17 = vpop.f32.mrf.mxu1 }
 0x9dd   : > { %v3240_v23 = vpop.f32.mrf.mxu0  ;;  %v2094_v35 = vpack.c.bf16 %v2087_v17, %v2084_v63  ;;  %v1576_v63 = vadd.f32 %v4239_v38, %v4265_v0 }
 0x9de   : > { %v3259_v62 = vpop.f32.mrf.mxu1 }
 0x9df   : > { %v1946_v15 = vpop.f32.mrf.mxu0 }
 0x9e0   : > { %v2091_v19 = vpack.c.bf16 %v1946_v15, %v1943_v48  ;;  %v2239_v34 = vpop.f32.mrf.mxu1  ;;  %v1568_v48 = vadd.f32 %v4243_v39, %v4267_v1  ;;  %v1592_v39 = vadd.f32 %v4251_v28, %v4273_v4 }
 0x9e1   : > { %v2240_v46 = vadd.f32 %v2239_v34, %v2187_v43  ;;  %v3241_v7 = vpop.f32.mrf.mxu0  ;;  %v1579_v43 = vadd.f32 %v4245_v52, %v4269_v2 }
 0x9e2   : > { %3262 = vmatprep.mubr.msk.bf16.mxu0 %vm448_vm2, %v2091_v19  ;;  %v3274_v8 = vpop.f32.mrf.mxu1  ;;  %v1571_v7 = vadd.f32 %v4247_v53, %v4271_v3  ;;  %v1595_v53 = vadd.f32 %v4258_v33, %v4277_v10  ;;  %v2193_v33 = vld [vmem:[#allocation8 + $0xf0] sm:$0xff] }
 0x9e3   : > { %v2037_v20 = vpop.f32.mrf.mxu0  ;;  %3263 = vmatmul.mubr.msk.bf16.vlgmr.msra.gmra.mxu0 %vm448_vm2, %v2092_v41  ;;  %v2399_v16 = vsel %vm646_vm3, %v2240_v46, -inf }
 0x9e4   : > { %3283 = vmatpush3.bf16.xpose.msra.mxu0 %v2305_v14  ;;  %2400 = vmax.xlane.f32.xlu0 %v2399_v16  ;;  %v2242_v9 = vpop.f32.mrf.mxu1 }
 0x9e5   : > { %v2243_v21 = vadd.f32 %v2242_v9, %v2188_v11  ;;  %v3252_v6 = vpop.f32.mrf.mxu0  ;;  %3294 = vmatprep.subr.bf16.mxu0 %v3744_v18 }
 0x9e6   : > { %v3275_v26 = vpop.f32.mrf.mxu1  ;;  %v1587_v6 = vadd.f32 %v4260_v56, %v4279_v12 }
 0x9e7   : > { %v2040_v27 = vpop.f32.mrf.mxu0  ;;  %v2402_v25 = vsel %vm646_vm3, %v2243_v21, -inf }
 0x9e8   : > { %v2093_v31 = vpack.c.bf16 %v2040_v27, %v2037_v20  ;;  %2403 = vmax.xlane.f32.xlu1 %v2402_v25  ;;  %v2290_v30 = vpop.f32.mrf.mxu1 }
 0x9e9   : > { %v2291_v36 = vadd.f32 %v2290_v30, %v2189_v29  ;;  %v3253_v37 = vpop.f32.mrf.mxu0  ;;  %v2192_v30 = vld [vmem:[#allocation8 + $0xe8] sm:$0xff] }
 0x9ea   : > { %3266 = vmatprep.mubr.msk.bf16.mxu0 %vm448_vm2, %v2093_v31  ;;  %v3280_v44 = vpop.f32.mrf.mxu1  ;;  %v2194_v37 = vld [vmem:[#allocation8 + $0xf8] sm:$0xff] }
 0x9eb   : > { %3267 = vmatmul.mubr.msk.bf16.gmra.mxu0 %vm448_vm2, %v2094_v35  ;;  %v2405_v40 = vsel %vm646_vm3, %v2291_v36, -inf }
 0x9ec   : > { %2406 = vmax.xlane.f32.xlu0 %v2405_v40  ;;  %v2293_v24 = vpop.f32.mrf.mxu1  ;;  %3284 = vmatprep.mubr.msk.bf16.mxu0 %vm3745_vm1, %v3744_v18 }
 0x9ed   : > { %v2294_v57 = vadd.f32 %v2293_v24, %v2190_v55 }
 0x9ee   : > { %v3281_v32 = vpop.f32.mrf.mxu1 }
 0x9ef   : > { %v2408_v22 = vsel %vm646_vm3, %v2294_v57, -inf }
 0x9f0   : > { %2409 = vmax.xlane.f32.xlu0 %v2408_v22  ;;  %v2392_v42 = vpop.f32.mrf.mxu1 }
 0x9f1   : > { %v2393_v35 = vadd.f32 %v2392_v42, %v2193_v33 }
 0x9f2   : > { %v3292_v58 = vpop.f32.mrf.mxu1 }
 0x9f3   : > { %3285 = vmatmul.mubr.msk.bf16.vlgmr.msra.gmra.mxu0 %vm448_vm2, %v2298_v49  ;;  %v2417_v24 = vsel %vm646_vm3, %v2393_v35, -inf }
 0x9f4   : > { %v2395_v59 = vpop.f32.mrf.mxu1  ;;  %3296 = vmatprep.mubr.msk.bf16.mxu0 %vm3745_vm1, %v3744_v18 }
 0x9f5   : > { %v2396_v55 = vadd.f32 %v2395_v59, %v2194_v37 }
 0x9f6   : > { %v3293_v60 = vpop.f32.mrf.mxu1 }
 0x9f7   : > { %v2420_v42 = vsel %vm646_vm3, %v2396_v55, -inf }
 0xa6d   : > { %v2401_v61 = vpop.xlane.xlu0 %2400 }
 0xa6e   : > { %v2423_v15 = vsub.f32 %v2240_v46, %v2401_v61  ;;  %v1584_v46 = vadd.f32 %v4256_v54, %v4275_v5  ;;  %v2191_v5 = vld [vmem:[#allocation8 + $0xe0] sm:$0xff] }
 0xa70   : > { %v2431_v1 = vmul.f32 1.442695, %v2423_v15 }
 0xa71   : > { %v2404_v19 = vpop.xlane.xlu1 %2403 }
 0xa72   : > { %v2424_v0 = vsub.f32 %v2243_v21, %v2404_v19  ;;  %3526 = vpow2.f32 %v2431_v1 }
 0xa74   : > { %v2433_v3 = vmul.f32 1.442695, %v2424_v0 }
 0xa75   : > { %v2407_v23 = vpop.xlane.xlu0 %2406 }
 0xa76   : > { %v2425_v11 = vsub.f32 %v2291_v36, %v2407_v23  ;;  %3528 = vpow2.f32 %v2433_v3 }
 0xa78   : > { %v2435_v9 = vmul.f32 1.442695, %v2425_v11 }
 0xa79   : > { %v2410_v52 = vpop.xlane.xlu0 %2409 }
 0xa7a   : > { %v2426_v21 = vsub.f32 %v2294_v57, %v2410_v52  ;;  %3530 = vpow2.f32 %v2435_v9 }
 0xa7c   : > { %v2437_v29 = vmul.f32 1.442695, %v2426_v21 }
 0xa7e   : > { %3532 = vpow2.f32 %v2437_v29 }
 0xa7f   : > { %v4422_v57 = vpop.eup %3526 }
 0xa80   : > { %v2447_v22 = vsel %vm646_vm3, %v4422_v57, 0.0 }
 0xa83   : > { %v3529_v32 = vpop.eup %3528 }
 0xa84   : > { %v2450_v59 = vsel %vm646_vm3, %v3529_v32, 0.0 }
 0xa87   : > { %v4427_v49 = vpop.eup %3530 }
 0xa88   : > { %v2453_v58 = vsel %vm646_vm3, %v4427_v49, 0.0 }
 0xa8b   : > { %v3533_v60 = vpop.eup %3532 }
 0xa8c   : > { %v2456_v61 = vsel %vm646_vm3, %v3533_v60, 0.0 }
 0xaa3   : > { %v3264_v13 = vpop.f32.mrf.mxu0 }
 0xaa4   : > { %v4391_v17 = vadd.f32 %v3264_v13, %v1576_v63 }
 0xaa5   : > { %v2147_v62 = vpop.f32.mrf.mxu0 }
 0xaa6   : > { %v4395_v34 = vadd.f32 %v2147_v62, %v1568_v48 }
 0xaa7   : > { %v3265_v41 = vpop.f32.mrf.mxu0 }
 0xaa8   : > { %v4399_v38 = vadd.f32 %v3265_v41, %v1579_v43 }
 0xaa9   : > { %v2150_v8 = vpop.f32.mrf.mxu0 }
 0xaaa   : > { %v4403_v14 = vadd.f32 %v2150_v8, %v1571_v7 }
 0xaab   : > { %v3268_v2 = vpop.f32.mrf.mxu0 }
 0xaac   : > { %v4407_v20 = vadd.f32 %v3268_v2, %v1592_v39 }
 0xaad   : > { %v2163_v16 = vpop.f32.mrf.mxu0 }
 0xaae   : > { %v4411_v28 = vadd.f32 %v2163_v16, %v1584_v46 }
 0xaaf   : > { %v3269_v4 = vpop.f32.mrf.mxu0 }
 0xab0   : > { %v4415_v26 = vadd.f32 %v3269_v4, %v1595_v53 }
 0xab1   : > { %v2166_v54 = vpop.f32.mrf.mxu0 }
 0xab2   : > { %v4417_v27 = vadd.f32 %v2166_v54, %v1587_v6 }
 0xab3   : > { %v2341_v10 = vpop.f32.mrf.mxu0 }
 0xab4   : > { %v2342_v25 = vadd.f32 %v2341_v10, %v2191_v5 }
 0xab5   : > { %v3286_v31 = vpop.f32.mrf.mxu0 }
 0xab6   : > { %v2411_v36 = vsel %vm646_vm3, %v2342_v25, -inf }
 0xab7   : > { %v2344_v56 = vpop.f32.mrf.mxu0  ;;  %2412 = vmax.xlane.f32.xlu1 %v2411_v36 }
 0xab8   : > { %v2345_v12 = vadd.f32 %v2344_v56, %v2192_v30 }
 0xab9   : > { %v3287_v44 = vpop.f32.mrf.mxu0 }
 0xaba   : > { %v2414_v40 = vsel %vm646_vm3, %v2345_v12, -inf }
 0xabb   : > { %2415 = vmax.xlane.f32.xlu0 %v2414_v40  ;;  %2418 = vmax.xlane.f32.xlu1 %v2417_v24 }
 0xabf   : > { %2448 = vadd.xlane.f32.xlu1 %v2447_v22  ;;  %2421 = vmax.xlane.f32.xlu0 %v2420_v42 }
 0xac3   : > { %2454 = vadd.xlane.f32.xlu1 %v2453_v58  ;;  %2451 = vadd.xlane.f32.xlu0 %v2450_v59  ;;  %v2684_v58 = vld [vmem:[#allocation7 + $0x18] sm:$0xff] }
 0xac4   : > { %v2685_v59 = vpack.c.bf16 %v2684_v58, %v2684_v58 }
 0xac7   : > { %2457 = vadd.xlane.f32.xlu0 %v2456_v61 }
 0xb40   : > { %v2413_v63 = vpop.xlane.xlu1 %2412 }
 0xb41   : > { %v2427_v2 = vsub.f32 %v2342_v25, %v2413_v63 }
 0xb43   : > { %v2439_v46 = vmul.f32 1.442695, %v2427_v2 }
 0xb44   : > { %v2416_v13 = vpop.xlane.xlu0 %2415  ;;  %v2419_v48 = vpop.xlane.xlu1 %2418 }
 0xb45   : > { %v2429_v23 = vsub.f32 %v2393_v35, %v2419_v48  ;;  %v2428_v62 = vsub.f32 %v2345_v12, %v2416_v13 }
 0xb47   : > { %v2443_v43 = vmul.f32 1.442695, %v2429_v23  ;;  %v2441_v41 = vmul.f32 1.442695, %v2428_v62 }
 0xb48   : > { %v2422_v15 = vpop.xlane.xlu0 %2421  ;;  %v2449_v9 = vpop.xlane.xlu1 %2448 }
 0xb49   : > { %v2430_v19 = vsub.f32 %v2396_v55, %v2422_v15  ;;  %3534 = vpow2.f32 %v2443_v43 }
 0xb4b   : > { %v2445_v7 = vmul.f32 1.442695, %v2430_v19 }
 0xb4c   : > { %v2452_v16 = vpop.xlane.xlu0 %2451  ;;  %v2455_v4 = vpop.xlane.xlu1 %2454 }
 0xb4d   : > { %3536 = vpow2.f32 %v2445_v7 }
 0xb4e   : > { %3538 = vpow2.f32 %v2441_v41 }
 0xb4f   : > { %3540 = vpow2.f32 %v2439_v46 }
 0xb50   : > { %3542 = vrcp.f32 %v2452_v16  ;;  %v2458_v21 = vpop.xlane.xlu0 %2457  ;;  %v2983_v16 = vld [vmem:[%s4537_s4] ss:$0 sm:$0xff] }
 0xb51   : > { %3544 = vrcp.f32 %v2449_v9 }
 0xb52   : > { %3546 = vrcp.f32 %v2458_v21 }
 0xb53   : > { %3548 = vrcp.f32 %v2455_v4 }
 0xb56   : > { %v3535_v0 = vpop.eup %3534 }
 0xb57   : > { %v2465_v8 = vsel %vm646_vm3, %v3535_v0, 0.0 }
 0xb58   : > { %2466 = vadd.xlane.f32.xlu1 %v2465_v8 }
 0xb5a   : > { %v3537_v39 = vpop.eup %3536 }
 0xb5b   : > { %v2468_v1 = vsel %vm646_vm3, %v3537_v39, 0.0  ;;  %v4435_v11 = vpop.eup %3538 }
 0xb5c   : > { %2469 = vadd.xlane.f32.xlu0 %v2468_v1  ;;  %v2462_v52 = vsel %vm646_vm3, %v4435_v11, 0.0  ;;  %v3541_v53 = vpop.eup %3540 }
 0xb5d   : > { %v2459_v3 = vsel %vm646_vm3, %v3541_v53, 0.0 }
 0xb60   : > { %2463 = vadd.xlane.f32.xlu0 %v2462_v52 }
 0xb69   : > { %2491 = vrot.lane.b32.xlu1 %v3977_v45, %s3756_s7  ;;  %v3543_v45 = vpop.eup %3542 }
 0xb6a   : > { %v3545_v6 = vpop.eup %3544  ;;  %v2480_v54 = vmul.f32 %v3543_v45, %v3529_v32 }
 0xb6b   : > { %v2479_v33 = vmul.f32 %v3545_v6, %v4422_v57 }
 0xb6d   : > { %v2487_v10 = vpack.c.bf16 %v2480_v54, %v2479_v33 }
 0xb76   : > { %2538 = vrot.lane.b32.xlu0 %v3987_v50, %s3756_s7 }
 0xb8d   : > { %2460 = vadd.xlane.f32.xlu1 %v2459_v3 }
 0xb9e   : > { %2585 = vrot.lane.b32.xlu1 %v3979_v47, %s3756_s7  ;;  %v3547_v47 = vpop.eup %3546 }
 0xb9f   : > { %v3549_v25 = vpop.eup %3548  ;;  %v2482_v31 = vmul.f32 %v3547_v47, %v3533_v60  ;;  %v2699_v60 = vsel %vm1449_vm4, %v2685_v59, 0 }
 0xba0   : > { %v2481_v35 = vmul.f32 %v3549_v25, %v4427_v49 }
 0xba2   : > { %2632 = vrot.lane.b32.xlu1 %v3989_v51, %s3756_s7  ;;  %v2488_v36 = vpack.c.bf16 %v2482_v31, %v2481_v35 }
 0xbe1   : > { %v2467_v50 = vpop.xlane.xlu1 %2466 }
 0xbe5   : > { %v2470_v5 = vpop.xlane.xlu0 %2469  ;;  %v2492_v29 = vpop.permute.xlu1 %2491 }
 0xbe6   : > { %3295 = vmatpush3.bf16.msra.mxu0 %v2492_v29  ;;  %3550 = vrcp.f32 %v2470_v5 }
 0xbe7   : > { %3306 = vmatprep.subr.bf16.mxu0 %v3744_v18  ;;  %3552 = vrcp.f32 %v2467_v50 }
 0xbe9   : > { %v2464_v51 = vpop.xlane.xlu0 %2463  ;;  %3297 = vmatmul.mubr.msk.bf16.vlgmr.msra.gmra.mxu0 %vm646_vm3, %v2487_v10 }
 0xbea   : > { %3308 = vmatprep.mubr.msk.bf16.mxu0 %vm3745_vm1, %v3744_v18  ;;  %3554 = vrcp.f32 %v2464_v51 }
 0xbed   : > { %v2539_v30 = vpop.permute.xlu0 %2538 }
 0xbee   : > { %3301 = vmatpush3.bf16.msra.mxu1 %v2539_v30 }
 0xbef   : > { %3312 = vmatprep.subr.bf16.mxu1 %v3744_v18 }
 0xbf1   : > { %3303 = vmatmul.mubr.msk.bf16.vlgmr.msra.gmra.mxu1 %vm646_vm3, %v2488_v36 }
 0xbf2   : > { %3314 = vmatprep.mubr.msk.bf16.mxu1 %vm3745_vm1, %v3744_v18 }
 0xbf3   : > { %v3551_v56 = vpop.eup %3550 }
 0xbf4   : > { %v3553_v44 = vpop.eup %3552  ;;  %v2486_v55 = vmul.f32 %v3551_v56, %v3537_v39 }
 0xbf5   : > { %v2485_v24 = vmul.f32 %v3553_v44, %v3535_v0 }
 0xbf7   : > { %v2490_v57 = vpack.c.bf16 %v2486_v55, %v2485_v24  ;;  %v3555_v32 = vpop.eup %3554 }
 0xbf8   : > { %v2484_v18 = vmul.f32 %v3555_v32, %v4435_v11 }
 0xc16   : > { %v2461_v37 = vpop.xlane.xlu1 %2460 }
 0xc17   : > { %3556 = vrcp.f32 %v2461_v37 }
 0xc1a   : > { %v2586_v12 = vpop.permute.xlu1 %2585 }
 0xc1b   : > { %3307 = vmatpush3.bf16.msra.mxu0 %v2586_v12 }
 0xc1c   : > { %3335 = vmatprep.subr.msk.bf16.mxu0 %vm1449_vm4, %v2685_v59 }
 0xc1e   : > { %v2633_v40 = vpop.permute.xlu1 %2632 }
 0xc1f   : > { %3313 = vmatpush3.bf16.msra.mxu1 %v2633_v40 }
 0xc22   : > { %3315 = vmatmul.mubr.msk.bf16.vlgmr.msra.gmra.mxu1 %vm646_vm3, %v2490_v57 }
 0xc24   : > { %v3557_v22 = vpop.eup %3556 }
 0xc25   : > { %v2483_v42 = vmul.f32 %v3557_v22, %v3541_v53 }
 0xc27   : > { %v2489_v49 = vpack.c.bf16 %v2484_v18, %v2483_v42 }
 0xc29   : > { %3309 = vmatmul.mubr.msk.bf16.vlgmr.msra.gmra.mxu0 %vm646_vm3, %v2489_v49 }
 0xc2a   : > { %3319 = vmatpush3.bf16.msra.mxu0 %v2699_v60 }
 0xca9   : > { %v2531_v61 = vpop.f32.mrf.mxu0 }
 0xcab   : > { %v3298_v63 = vpop.f32.mrf.mxu0 }
 0xcad   : > { %v2534_v13 = vpop.f32.mrf.mxu0 }
 0xcae   : > { %v2679_v48 = vpack.c.bf16 %v2534_v13, %v2531_v61 }
 0xcaf   : > { %v3299_v23 = vpop.f32.mrf.mxu0 }
 0xcb0   : > { %3320 = vmatprep.mubr.msk.bf16.mxu0 %vm448_vm2, %v2679_v48 }
 0xcb1   : > { %v2578_v62 = vpop.f32.mrf.mxu1 }
 0xcb3   : > { %v3304_v43 = vpop.f32.mrf.mxu1 }
 0xcb5   : > { %v2581_v15 = vpop.f32.mrf.mxu1 }
 0xcb6   : > { %v2680_v19 = vpack.c.bf16 %v2581_v15, %v2578_v62 }
 0xcb7   : > { %v3305_v41 = vpop.f32.mrf.mxu1 }
 0xcb8   : > { %3321 = vmatmul.mubr.msk.bf16.vlgmr.msra.gmra.mxu0 %vm448_vm2, %v2680_v19 }
 0xce2   : > { %v2672_v7 = vpop.f32.mrf.mxu1 }
 0xce4   : > { %v3316_v0 = vpop.f32.mrf.mxu1 }
 0xce6   : > { %v2675_v8 = vpop.f32.mrf.mxu1 }
 0xce7   : > { %v2682_v46 = vpack.c.bf16 %v2675_v8, %v2672_v7 }
 0xce8   : > { %v3317_v39 = vpop.f32.mrf.mxu1 }
 0xce9   : > { %v2625_v1 = vpop.f32.mrf.mxu0 }
 0xceb   : > { %v3310_v11 = vpop.f32.mrf.mxu0 }
 0xced   : > { %v2628_v52 = vpop.f32.mrf.mxu0 }
 0xcee   : > { %v2681_v2 = vpack.c.bf16 %v2628_v52, %v2625_v1 }
 0xcef   : > { %v3311_v53 = vpop.f32.mrf.mxu0 }
 0xcf0   : > { %3324 = vmatprep.mubr.msk.bf16.mxu0 %vm448_vm2, %v2681_v2 }
 0xcf1   : > { %3325 = vmatmul.mubr.msk.bf16.gmra.mxu0 %vm448_vm2, %v2682_v46 }
 0xd78   : > { %v3322_v3 = vpop.f32.mrf.mxu0 }
 0xd79   : > { %v2768_v9 = vadd.f32 %v3322_v3, %v4391_v17 }
 0xd7a   : > { %v2735_v21 = vpop.f32.mrf.mxu0 }
 0xd7b   : > { %v2783_v4 = vadd.f32 %v2983_v16, %v2768_v9  ;;  %v2766_v45 = vadd.f32 %v2735_v21, %v4395_v34 }
 0xd7c   : > { %v3323_v50 = vpop.f32.mrf.mxu0 }
 0xd7d   : > { %2791 = vst.msk [vmem:[%s314_s20 + $0x10] sm:$0xff] %vm343_vm0, %v2783_v4  ;;  %v2781_v6 = vadd.f32 %v2983_v16, %v2766_v45  ;;  %v2769_v54 = vadd.f32 %v3323_v50, %v4399_v38 }
 0xd7e   : > { %v2738_v5 = vpop.f32.mrf.mxu0 }
 0xd7f   : > { %2789 = vst.msk [vmem:[%s314_s20] sm:$0xff] %vm343_vm0, %v2781_v6  ;;  %v2784_v29 = vadd.f32 %v2983_v16, %v2769_v54  ;;  %v2767_v33 = vadd.f32 %v2738_v5, %v4403_v14 }
 0xd81   : > { %2792 = vst.msk [vmem:[%s314_s20 + $0x18] sm:$0xff] %vm343_vm0, %v2784_v29  ;;  %v2782_v17 = vadd.f32 %v2983_v16, %v2767_v33 }
 0xd83   : > { %2790 = vst.msk [vmem:[%s314_s20 + $0x8] sm:$0xff] %vm343_vm0, %v2782_v17 }
 0xdb1   : > { %v3326_v34 = vpop.f32.mrf.mxu0 }
 0xdb2   : > { %v2772_v47 = vadd.f32 %v3326_v34, %v4407_v20 }
 0xdb3   : > { %v2751_v10 = vpop.f32.mrf.mxu0 }
 0xdb4   : > { %v2787_v51 = vadd.f32 %v2983_v16, %v2772_v47  ;;  %v2770_v25 = vadd.f32 %v2751_v10, %v4411_v28 }
 0xdb5   : > { %v3327_v38 = vpop.f32.mrf.mxu0 }
 0xdb6   : > { %2795 = vst.msk [vmem:[%s314_s20 + $0x30] sm:$0xff] %vm343_vm0, %v2787_v51  ;;  %v2785_v31 = vadd.f32 %v2983_v16, %v2770_v25  ;;  %v2773_v14 = vadd.f32 %v3327_v38, %v4415_v26 }
 0xdb7   : > { %v2754_v30 = vpop.f32.mrf.mxu0 }
 0xdb8   : > { %2793 = vst.msk [vmem:[%s314_s20 + $0x20] sm:$0xff] %vm343_vm0, %v2785_v31  ;;  %v2788_v35 = vadd.f32 %v2983_v16, %v2773_v14  ;;  %v2771_v20 = vadd.f32 %v2754_v30, %v4417_v27 }
 0xdba   : > { %2796 = vst.msk [vmem:[%s314_s20 + $0x38] sm:$0xff] %vm343_vm0, %v2788_v35  ;;  %v2786_v28 = vadd.f32 %v2983_v16, %v2771_v20 }
 0xdbc   : > { %2794 = vst.msk [vmem:[%s314_s20 + $0x28] sm:$0xff] %vm343_vm0, %v2786_v28 }
 0xdbd   : > { %3677 = shalt.err (!%p3674_p10)
}
 0xdbe   : > { %s3678_s12 = scalar_lea.hbm %s4486_s26, 1024  ;;  %s3682_s29 = scalar_lea.hbm %s4539_s6, 2048 }
 0xdbf   : > { %p3679_p6 = scmp.ne.s32.totalorder %s4486_s26, %s3678_s12  ;;  %p3683_p3 = scmp.lt.s32.totalorder %s4486_s26, %s4539_s6 }
 0xdc0   : > { %p3684_p11 = scmp.lt.s32.totalorder %s3682_s29, %s3678_s12 }
 0xdc1   : > { %p3680_p4 = pnand %p3679_p6, %p4560_p1 }
 0xdc2   : > { %p3685_p5 = por %p3684_p11, %p3683_p3 }
 0xdc3   : > { %p3681_p8 = pneg %p3680_p4 }
 0xdc5   : > { %p3686_p7 = pnand %p3685_p5, %p3681_p8 }
 0xdc7   : > { %3689 = shalt.err (!%p3686_p7)
}
 0xdc8   : > { %s3758_s8 = smov 128   ;;  %s3759_s19 = smov 8  }
 0xdc9   : > { %3350 = dma.vmem_to_hbm [thread:$0]  (%p4560_p1), %s4488_s30, 1024, %s4486_s26, %s2798_s25, %s3758_s8, %s3758_s8, %s3759_s19  }
 0xdca PF: > { %s2827_s16 = sand.u32 1, %s3724_s21   ;;  %p4561_p12 = scmp.ne.s32.totalorder %s4547_s28, 0 }
 0xdcb   : > { %p4562_p9 = scmp.ge.s32.totalorder %s3736_s24, 2  ;;  %s2828_s17 = scalar_lea.sflag [#allocation4], %s2827_s16 }
 0xdcd   : > { %p3367_p13 = pnand %p4562_p9, %p4561_p12 }
 0xdcf   : > { %p3368_p0 = pneg %p3367_p13 }
 0xdd1   : > { %3719 = dma.done.wait (%p3368_p0), %s2828_s17, 1024  }
 0xdd2   : > { %3721 = vsyncadd (%p3368_p0), %s2828_s17, 4294966272  ;;  %p21_p2 = scmp.ge.s32.totalorder %s3884_s9, 4   ;;  %s4563_s21 = smov %s3728_s22 }
 0xdd3   : > { %s4564_s22 = smov %s3732_s23  ;;  %s4565_s23 = smov %s3894_s11 }
 0xdd4   : > { %s4566_s24 = smov %s3884_s9  ;;  %23 = sbr.rel (!%p21_p2) target bundleno = 7 (0x7), region = 107 }
 0xdd9   :  { %2833 = vsyncpa [#allocation3], 1 }
 0xdda   :  { %2835 = vsyncpa [#allocation3 + $0x1], 1 }
 0xddb   :  { %2836 = vsyncpa [#allocation6], 1 }
 0xddc   :  { %2837 = vsyncpa [#allocation9], 1 }
 0xddd   :  { %2838 = vsyncpa [#allocation4], 1 }
 0xdde   :  { %2840 = vsyncpa [#allocation4 + $0x1], 1 }

</bundles_post_ra>
